<compile_context>
chip_gen: v5e
topology: v5e:2x2
jax: 0.10.0
libtpu: 0.0.40
codegen_flags: <defaults>
</compile_context>

<pallas_src>
import jax
import jax.numpy as jnp
from jax.experimental import pallas as pl
from jax.experimental.pallas import tpu as pltpu


# ----------------------------------------------------------------------------
# Fused kernel factory
# ----------------------------------------------------------------------------
def _make_fused_kernel(BB, layers):
    """BB: per-grid-step batch tile. layers: list of (K, Cin, Cout, Lin, Lout, left)."""

    def conv_pool_relu(x, w_ref, b_ref, K, Cin, Cout, Lin, Lout, left):
        # x: (BB, Lin, Cin) f32.  w_ref: (K, Cin, Cout) bf16.  b_ref: (1, 1, Cout) f32.
        right = K - 1 - left
        parts = []
        if left > 0:
            parts.append(jnp.zeros((BB, left, Cin), jnp.float32))
        parts.append(x)
        if right > 0:
            parts.append(jnp.zeros((BB, right, Cin), jnp.float32))
        # 'same' padding realised at the value level (no scratch ref, no halo zeroing).
        xpad = jnp.concatenate(parts, axis=1) if len(parts) > 1 else x  # (BB, Lin+K-1, Cin)

        wl = w_ref[...]  # (K, Cin, Cout) bf16, tiny — load once per layer

        def tap(k):
            # contiguous (unstrided) slice -> one 2-D MXU matmul per tap
            slab = xpad[:, k:k + Lin, :].reshape(BB * Lin, Cin).astype(jnp.bfloat16)
            return jnp.dot(slab, wl[k], preferred_element_type=jnp.float32)

        conv = tap(0)
        for k in range(1, K):                      # shift-and-accumulate over taps
            conv = conv + tap(k)                   # (BB*Lin, Cout) f32

        # MaxPool1d(2): rows come out ordered (b, t); pair (2p, 2p+1) -> max.
        # bias is position-independent so maxpool(conv)+bias == maxpool(conv+bias).
        pooled = jnp.max(conv.reshape(BB, Lout, 2, Cout), axis=2)       # (BB, Lout, Cout)
        # Dropout = identity (inference); single bias broadcast per layer, then ReLU.
        return jnp.maximum(pooled + b_ref[...], 0.0)

    def kernel(x_ref,
               w0_ref, b0_ref, w1_ref, b1_ref, w2_ref, b2_ref,
               fw1_ref, fb1_ref, fw2_ref, fb2_ref,
               o_ref):
        w_refs = (w0_ref, w1_ref, w2_ref)
        b_refs = (b0_ref, b1_ref, b2_ref)

        y = x_ref[...].astype(jnp.float32)                               # (BB, L0, Cin0)
        for i, (K, Cin, Cout, Lin, Lout, left) in enumerate(layers):
            y = conv_pool_relu(y, w_refs[i], b_refs[i], K, Cin, Cout, Lin, Lout, left)

        # Head: AdaptiveAvgPool1d(1) -> fc1 -> ReLU -> Dropout(id) -> fc2 -> softmax(dim=1)
        g = jnp.mean(y, axis=1)                                          # (BB, C_last)
        h = jnp.dot(g.astype(jnp.bfloat16), fw1_ref[...],
                    preferred_element_type=jnp.float32) + fb1_ref[...]
        h = jnp.maximum(h, 0.0)
        logits = jnp.dot(h.astype(jnp.bfloat16), fw2_ref[...],
                         preferred_element_type=jnp.float32) + fb2_ref[...]
        m = jnp.max(logits, axis=-1, keepdims=True)
        e = jnp.exp(logits - m)
        # Output kept (BB, n_classes): at tiny B a single masked store beats a 128-lane
        # padded slab + host-side slice.  Revisit once B is large (lane-dense store).
        o_ref[...] = (e / jnp.sum(e, axis=-1, keepdims=True)).astype(o_ref.dtype)

    return kernel


# ----------------------------------------------------------------------------
# Config / params
# ----------------------------------------------------------------------------
def make_config(input_dim, hidden_dim, kernel_size, output_dim, seq_len):
    layers = []
    cin, Lin = input_dim, seq_len
    for i in range(3):
        cout = hidden_dim // (2 ** i)
        K = kernel_size // (2 ** i)
        assert K >= 1 and cout >= 1
        assert Lin % 2 == 0, "sequence length must stay even through the three MaxPool1d(2)"
        left = (K - 1) // 2            # PyTorch padding='same': left=(K-1)//2, right=K-1-left
        Lout = Lin // 2
        layers.append((K, cin, cout, Lin, Lout, left))
        cin, Lin = cout, Lout
    fc1_in = (hidden_dim // 4) * (kernel_size // 8)
    assert fc1_in == cin, (
        "fc1.in_features (%d) must equal the channel count reaching the global pool (%d); "
        "choose kernel_size in [8, 15]" % (fc1_in, cin))
    return {"layers": layers, "C_last": cin, "fc1_in": fc1_in,
            "H8": hidden_dim // 8, "output_dim": output_dim, "seq_len": seq_len}


def init_params(key, cfg):
    """Deterministic parameters in PyTorch layouts (Conv1d: (Cout, Cin, K); Linear: (out, in))."""
    keys = jax.random.split(key, 10)
    ki = 0
    params = {"conv": []}
    for (K, cin, cout, _Lin, _Lout, _left) in cfg["layers"]:
        scale = (cin * K) ** -0.5
        w = jax.random.normal(keys[ki], (cout, cin, K), jnp.float32) * scale; ki += 1
        b = jax.random.normal(keys[ki], (cout,), jnp.float32) * 0.05; ki += 1
        params["conv"].append((w, b))
    fc1_in, H8, O = cfg["fc1_in"], cfg["H8"], cfg["output_dim"]
    params["fc1_w"] = jax.random.normal(keys[ki], (H8, fc1_in), jnp.float32) * (fc1_in ** -0.5); ki += 1
    params["fc1_b"] = jax.random.normal(keys[ki], (H8,), jnp.float32) * 0.05; ki += 1
    params["fc2_w"] = jax.random.normal(keys[ki], (O, H8), jnp.float32) * (H8 ** -0.5); ki += 1
    params["fc2_b"] = jax.random.normal(keys[ki], (O,), jnp.float32) * 0.05; ki += 1
    return params


def pack_params(params, cfg):
    """PyTorch layouts -> kernel layouts (done once, outside the forward pass).

    Conv1d weight (Cout, Cin, K) -> K bf16 slabs stacked as (K, Cin, Cout) for
    shift-and-accumulate.  Linear weight (out, in) -> (in, out) bf16.
    Biases -> broadcast-ready f32: conv (1, 1, Cout), fc (1, n).
    """
    packed = {"conv_w": [], "conv_b": []}
    for (w, b), (K, cin, cout, _Lin, _Lout, _left) in zip(params["conv"], cfg["layers"]):
        packed["conv_w"].append(jnp.transpose(w, (2, 1, 0)).astype(jnp.bfloat16))  # (K, Cin, Cout)
        packed["conv_b"].append(b.reshape(1, 1, cout).astype(jnp.float32))
    packed["fc1_w"] = params["fc1_w"].T.astype(jnp.bfloat16)
    packed["fc1_b"] = params["fc1_b"].reshape(1, -1).astype(jnp.float32)
    packed["fc2_w"] = params["fc2_w"].T.astype(jnp.bfloat16)
    packed["fc2_b"] = params["fc2_b"].reshape(1, -1).astype(jnp.float32)
    return packed


# ----------------------------------------------------------------------------
# Forward (one pallas_call, batch blocked over a parallel grid)
# ----------------------------------------------------------------------------
def make_forward(cfg, batch, block_b=None):
    layers = cfg["layers"]
    if block_b is None:
        block_b = batch            # one grid step at demo size; use a multiple of 8 at scale
    assert batch % block_b == 0
    assert block_b == batch or block_b % 8 == 0, \
        "batch tile must be 8-aligned when it does not cover the full batch"

    kernel = _make_fused_kernel(block_b, layers)

    _K0, Cin0, _Cout0, L0, _Lout0, _left0 = layers[0]
    O = cfg["output_dim"]
    fc1_in, H8 = cfg["fc1_in"], cfg["H8"]

    in_specs = [pl.BlockSpec((block_b, L0, Cin0), lambda i: (i, 0, 0))]
    for (K, Cin, Cout, _Lin, _Lout, _left) in layers:
        # weights/biases: constant index_map -> stay VMEM-resident across grid steps
        in_specs.append(pl.BlockSpec((K, Cin, Cout), lambda i: (0, 0, 0)))
        in_specs.append(pl.BlockSpec((1, 1, Cout), lambda i: (0, 0, 0)))
    in_specs += [
        pl.BlockSpec((fc1_in, H8), lambda i: (0, 0)),
        pl.BlockSpec((1, H8), lambda i: (0, 0)),
        pl.BlockSpec((H8, O), lambda i: (0, 0)),
        pl.BlockSpec((1, O), lambda i: (0, 0)),
    ]
    out_spec = pl.BlockSpec((block_b, O), lambda i: (i, 0))

    call = pl.pallas_call(
        kernel,
        out_shape=jax.ShapeDtypeStruct((batch, O), jnp.float32),
        grid=(batch // block_b,),
        in_specs=in_specs,
        out_specs=out_spec,
        compiler_params=pltpu.CompilerParams(
            dimension_semantics=("parallel",)),      # shards batch tiles across TCs (v7x)
    )

    @jax.jit
    def forward(x_ncl, packed):
        # (B, Cin, L) -> (B, L, Cin): channels on the lane dim.  Negligible at this size;
        # fold into the kernel's read pattern only once B*L*Cin becomes a full HBM pass.
        x_blc = jnp.transpose(x_ncl, (0, 2, 1)).astype(jnp.float32)
        return call(
            x_blc,
            packed["conv_w"][0], packed["conv_b"][0],
            packed["conv_w"][1], packed["conv_b"][1],
            packed["conv_w"][2], packed["conv_b"][2],
            packed["fc1_w"], packed["fb1"] if False else packed["fc1_b"],
            packed["fc2_w"], packed["fc2_b"])

    return forward


# ----------------------------------------------------------------------------
# Pure-JAX reference (f32) for a tolerance check
# ----------------------------------------------------------------------------
def reference_forward(x_ncl, params, cfg):
    B = x_ncl.shape[0]
    x = jnp.transpose(x_ncl, (0, 2, 1)).astype(jnp.float32)      # (B, L, Cin)
    for (w, b), (K, _Cin, Cout, Lin, Lout, left) in zip(params["conv"], cfg["layers"]):
        right = K - 1 - left
        xpad = jnp.pad(x, ((0, 0), (left, right), (0, 0)))
        conv = jnp.zeros((B, Lin, Cout), jnp.float32)
        for k in range(K):
            conv = conv + jnp.einsum("blc,oc->blo", xpad[:, k:k + Lin, :], w[:, :, k])
        conv = conv + b[None, None, :]
        pooled = jnp.max(conv.reshape(B, Lout, 2, Cout), axis=2)
        x = jax.nn.relu(pooled)                                  # Dropout = identity
    g = jnp.mean(x, axis=1)
    h = jax.nn.relu(g @ params["fc1_w"].T + params["fc1_b"])
    logits = h @ params["fc2_w"].T + params["fc2_b"]
    return jax.nn.softmax(logits, axis=1)


if __name__ == "__main__":
    key = jax.random.PRNGKey(0)
    k_x, k_p = jax.random.split(key)

    # small shapes consistent with the module
    B, input_dim, L = 2, 4, 16
    hidden_dim, kernel_size, output_dim = 32, 8, 3

    cfg = make_config(input_dim, hidden_dim, kernel_size, output_dim, L)
    params = init_params(k_p, cfg)
    packed = pack_params(params, cfg)

    x = jax.random.normal(k_x, (B, input_dim, L), jnp.float32)   # PyTorch NCL input
    forward = make_forward(cfg, B)

    out = jax.block_until_ready(forward(x, packed))

    assert out.shape == (B, output_dim), out.shape
    row_sums = jnp.sum(out, axis=1)
    assert bool(jnp.all(jnp.abs(row_sums - 1.0) < 1e-4)), row_sums
    assert bool(jnp.all(out >= 0.0))

    ref = reference_forward(x, params, cfg)
    assert bool(jnp.all(jnp.abs(out - ref) < 5e-2)), (out, ref)   # bf16-matmul tolerance

    print("KERNEL_OK")
</pallas_src>

<mosaic_0001>
module attributes {stable_mosaic.version = 11 : i64} {
  func.func @kernel(%arg0: i32, %arg1: memref<2x16x4xf32, #tpu.memory_space<vmem>>, %arg2: memref<8x4x32xbf16, #tpu.memory_space<vmem>>, %arg3: memref<1x1x32xf32, #tpu.memory_space<vmem>>, %arg4: memref<4x32x16xbf16, #tpu.memory_space<vmem>>, %arg5: memref<1x1x16xf32, #tpu.memory_space<vmem>>, %arg6: memref<2x16x8xbf16, #tpu.memory_space<vmem>>, %arg7: memref<1x1x8xf32, #tpu.memory_space<vmem>>, %arg8: memref<8x4xbf16, #tpu.memory_space<vmem>>, %arg9: memref<1x4xf32, #tpu.memory_space<vmem>>, %arg10: memref<4x3xbf16, #tpu.memory_space<vmem>>, %arg11: memref<1x3xf32, #tpu.memory_space<vmem>>, %arg12: memref<2x3xf32, #tpu.memory_space<vmem>>) attributes {dimension_semantics = [#tpu.dimension_semantics<parallel>], iteration_bounds = array<i64: 1>, scalar_prefetch = 0 : i64, scratch_operands = 0 : i64, tpu.core_type = #tpu.core_type<tc>, window_params = [{transform_indices = @transform_0, window_bounds = array<i64: 2, 16, 4>}, {pipeline_mode = #tpu.pipeline_mode<synchronous>, transform_indices = @transform_1, window_bounds = array<i64: 8, 4, 32>}, {pipeline_mode = #tpu.pipeline_mode<synchronous>, transform_indices = @transform_2, window_bounds = array<i64: 1, 1, 32>}, {pipeline_mode = #tpu.pipeline_mode<synchronous>, transform_indices = @transform_3, window_bounds = array<i64: 4, 32, 16>}, {pipeline_mode = #tpu.pipeline_mode<synchronous>, transform_indices = @transform_4, window_bounds = array<i64: 1, 1, 16>}, {pipeline_mode = #tpu.pipeline_mode<synchronous>, transform_indices = @transform_5, window_bounds = array<i64: 2, 16, 8>}, {pipeline_mode = #tpu.pipeline_mode<synchronous>, transform_indices = @transform_6, window_bounds = array<i64: 1, 1, 8>}, {pipeline_mode = #tpu.pipeline_mode<synchronous>, transform_indices = @transform_7, window_bounds = array<i64: 8, 4>}, {pipeline_mode = #tpu.pipeline_mode<synchronous>, transform_indices = @transform_8, window_bounds = array<i64: 1, 4>}, {pipeline_mode = #tpu.pipeline_mode<synchronous>, transform_indices = @transform_9, window_bounds = array<i64: 4, 3>}, {pipeline_mode = #tpu.pipeline_mode<synchronous>, transform_indices = @transform_10, window_bounds = array<i64: 1, 3>}, {transform_indices = @transform_11, window_bounds = array<i64: 2, 3>}]} {
    %c0 = arith.constant 0 : index
    %c0_0 = arith.constant 0 : index
    %c0_1 = arith.constant 0 : index
    %0 = vector.load %arg1[%c0, %c0_0, %c0_1] : memref<2x16x4xf32, #tpu.memory_space<vmem>>, vector<2x16x4xf32>
    %cst = arith.constant 0.000000e+00 : f32
    %1 = vector.broadcast %cst : f32 to vector<2x3x4xf32>
    %cst_2 = arith.constant 0.000000e+00 : f32
    %2 = vector.broadcast %cst_2 : f32 to vector<2x4x4xf32>
    %3 = tpu.concatenate %1, %0, %2 in 1 : vector<2x3x4xf32>, vector<2x16x4xf32>, vector<2x4x4xf32> -> vector<2x23x4xf32>
    %c0_3 = arith.constant 0 : index
    %c0_4 = arith.constant 0 : index
    %c0_5 = arith.constant 0 : index
    %4 = vector.load %arg2[%c0_3, %c0_4, %c0_5] : memref<8x4x32xbf16, #tpu.memory_space<vmem>>, vector<8x4x32xbf16>
    %5 = vector.extract_strided_slice %3 {offsets = [0, 0, 0], sizes = [2, 16, 4], strides = [1, 1, 1]} : vector<2x23x4xf32> to vector<2x16x4xf32>
    %6 = vector.shape_cast %5 : vector<2x16x4xf32> to vector<32x4xf32>
    %7 = arith.truncf %6 : vector<32x4xf32> to vector<32x4xbf16>
    %8 = vector.extract_strided_slice %4 {offsets = [0, 0, 0], sizes = [1, 4, 32], strides = [1, 1, 1]} : vector<8x4x32xbf16> to vector<1x4x32xbf16>
    %9 = vector.shape_cast %8 : vector<1x4x32xbf16> to vector<4x32xbf16>
    %cst_6 = arith.constant dense<0.000000e+00> : vector<32x32xf32>
    %10 = tpu.matmul %7, %9, %cst_6 {dimension_numbers = #tpu.dot_dimension_numbers<[1], [0], [0], [1], [0, 0, 1, 1], [], []>} : vector<32x4xbf16>, vector<4x32xbf16>, vector<32x32xf32> -> vector<32x32xf32>
    %11 = vector.extract_strided_slice %3 {offsets = [0, 1, 0], sizes = [2, 16, 4], strides = [1, 1, 1]} : vector<2x23x4xf32> to vector<2x16x4xf32>
    %12 = vector.shape_cast %11 : vector<2x16x4xf32> to vector<32x4xf32>
    %13 = arith.truncf %12 : vector<32x4xf32> to vector<32x4xbf16>
    %14 = vector.extract_strided_slice %4 {offsets = [1, 0, 0], sizes = [1, 4, 32], strides = [1, 1, 1]} : vector<8x4x32xbf16> to vector<1x4x32xbf16>
    %15 = vector.shape_cast %14 : vector<1x4x32xbf16> to vector<4x32xbf16>
    %cst_7 = arith.constant dense<0.000000e+00> : vector<32x32xf32>
    %16 = tpu.matmul %13, %15, %cst_7 {dimension_numbers = #tpu.dot_dimension_numbers<[1], [0], [0], [1], [0, 0, 1, 1], [], []>} : vector<32x4xbf16>, vector<4x32xbf16>, vector<32x32xf32> -> vector<32x32xf32>
    %17 = arith.addf %10, %16 : vector<32x32xf32>
    %18 = vector.extract_strided_slice %3 {offsets = [0, 2, 0], sizes = [2, 16, 4], strides = [1, 1, 1]} : vector<2x23x4xf32> to vector<2x16x4xf32>
    %19 = vector.shape_cast %18 : vector<2x16x4xf32> to vector<32x4xf32>
    %20 = arith.truncf %19 : vector<32x4xf32> to vector<32x4xbf16>
    %21 = vector.extract_strided_slice %4 {offsets = [2, 0, 0], sizes = [1, 4, 32], strides = [1, 1, 1]} : vector<8x4x32xbf16> to vector<1x4x32xbf16>
    %22 = vector.shape_cast %21 : vector<1x4x32xbf16> to vector<4x32xbf16>
    %cst_8 = arith.constant dense<0.000000e+00> : vector<32x32xf32>
    %23 = tpu.matmul %20, %22, %cst_8 {dimension_numbers = #tpu.dot_dimension_numbers<[1], [0], [0], [1], [0, 0, 1, 1], [], []>} : vector<32x4xbf16>, vector<4x32xbf16>, vector<32x32xf32> -> vector<32x32xf32>
    %24 = arith.addf %17, %23 : vector<32x32xf32>
    %25 = vector.extract_strided_slice %3 {offsets = [0, 3, 0], sizes = [2, 16, 4], strides = [1, 1, 1]} : vector<2x23x4xf32> to vector<2x16x4xf32>
    %26 = vector.shape_cast %25 : vector<2x16x4xf32> to vector<32x4xf32>
    %27 = arith.truncf %26 : vector<32x4xf32> to vector<32x4xbf16>
    %28 = vector.extract_strided_slice %4 {offsets = [3, 0, 0], sizes = [1, 4, 32], strides = [1, 1, 1]} : vector<8x4x32xbf16> to vector<1x4x32xbf16>
    %29 = vector.shape_cast %28 : vector<1x4x32xbf16> to vector<4x32xbf16>
    %cst_9 = arith.constant dense<0.000000e+00> : vector<32x32xf32>
    %30 = tpu.matmul %27, %29, %cst_9 {dimension_numbers = #tpu.dot_dimension_numbers<[1], [0], [0], [1], [0, 0, 1, 1], [], []>} : vector<32x4xbf16>, vector<4x32xbf16>, vector<32x32xf32> -> vector<32x32xf32>
    %31 = arith.addf %24, %30 : vector<32x32xf32>
    %32 = vector.extract_strided_slice %3 {offsets = [0, 4, 0], sizes = [2, 16, 4], strides = [1, 1, 1]} : vector<2x23x4xf32> to vector<2x16x4xf32>
    %33 = vector.shape_cast %32 : vector<2x16x4xf32> to vector<32x4xf32>
    %34 = arith.truncf %33 : vector<32x4xf32> to vector<32x4xbf16>
    %35 = vector.extract_strided_slice %4 {offsets = [4, 0, 0], sizes = [1, 4, 32], strides = [1, 1, 1]} : vector<8x4x32xbf16> to vector<1x4x32xbf16>
    %36 = vector.shape_cast %35 : vector<1x4x32xbf16> to vector<4x32xbf16>
    %cst_10 = arith.constant dense<0.000000e+00> : vector<32x32xf32>
    %37 = tpu.matmul %34, %36, %cst_10 {dimension_numbers = #tpu.dot_dimension_numbers<[1], [0], [0], [1], [0, 0, 1, 1], [], []>} : vector<32x4xbf16>, vector<4x32xbf16>, vector<32x32xf32> -> vector<32x32xf32>
    %38 = arith.addf %31, %37 : vector<32x32xf32>
    %39 = vector.extract_strided_slice %3 {offsets = [0, 5, 0], sizes = [2, 16, 4], strides = [1, 1, 1]} : vector<2x23x4xf32> to vector<2x16x4xf32>
    %40 = vector.shape_cast %39 : vector<2x16x4xf32> to vector<32x4xf32>
    %41 = arith.truncf %40 : vector<32x4xf32> to vector<32x4xbf16>
    %42 = vector.extract_strided_slice %4 {offsets = [5, 0, 0], sizes = [1, 4, 32], strides = [1, 1, 1]} : vector<8x4x32xbf16> to vector<1x4x32xbf16>
    %43 = vector.shape_cast %42 : vector<1x4x32xbf16> to vector<4x32xbf16>
    %cst_11 = arith.constant dense<0.000000e+00> : vector<32x32xf32>
    %44 = tpu.matmul %41, %43, %cst_11 {dimension_numbers = #tpu.dot_dimension_numbers<[1], [0], [0], [1], [0, 0, 1, 1], [], []>} : vector<32x4xbf16>, vector<4x32xbf16>, vector<32x32xf32> -> vector<32x32xf32>
    %45 = arith.addf %38, %44 : vector<32x32xf32>
    %46 = vector.extract_strided_slice %3 {offsets = [0, 6, 0], sizes = [2, 16, 4], strides = [1, 1, 1]} : vector<2x23x4xf32> to vector<2x16x4xf32>
    %47 = vector.shape_cast %46 : vector<2x16x4xf32> to vector<32x4xf32>
    %48 = arith.truncf %47 : vector<32x4xf32> to vector<32x4xbf16>
    %49 = vector.extract_strided_slice %4 {offsets = [6, 0, 0], sizes = [1, 4, 32], strides = [1, 1, 1]} : vector<8x4x32xbf16> to vector<1x4x32xbf16>
    %50 = vector.shape_cast %49 : vector<1x4x32xbf16> to vector<4x32xbf16>
    %cst_12 = arith.constant dense<0.000000e+00> : vector<32x32xf32>
    %51 = tpu.matmul %48, %50, %cst_12 {dimension_numbers = #tpu.dot_dimension_numbers<[1], [0], [0], [1], [0, 0, 1, 1], [], []>} : vector<32x4xbf16>, vector<4x32xbf16>, vector<32x32xf32> -> vector<32x32xf32>
    %52 = arith.addf %45, %51 : vector<32x32xf32>
    %53 = vector.extract_strided_slice %3 {offsets = [0, 7, 0], sizes = [2, 16, 4], strides = [1, 1, 1]} : vector<2x23x4xf32> to vector<2x16x4xf32>
    %54 = vector.shape_cast %53 : vector<2x16x4xf32> to vector<32x4xf32>
    %55 = arith.truncf %54 : vector<32x4xf32> to vector<32x4xbf16>
    %56 = vector.extract_strided_slice %4 {offsets = [7, 0, 0], sizes = [1, 4, 32], strides = [1, 1, 1]} : vector<8x4x32xbf16> to vector<1x4x32xbf16>
    %57 = vector.shape_cast %56 : vector<1x4x32xbf16> to vector<4x32xbf16>
    %cst_13 = arith.constant dense<0.000000e+00> : vector<32x32xf32>
    %58 = tpu.matmul %55, %57, %cst_13 {dimension_numbers = #tpu.dot_dimension_numbers<[1], [0], [0], [1], [0, 0, 1, 1], [], []>} : vector<32x4xbf16>, vector<4x32xbf16>, vector<32x32xf32> -> vector<32x32xf32>
    %59 = arith.addf %52, %58 : vector<32x32xf32>
    %60 = vector.shape_cast %59 : vector<32x32xf32> to vector<2x8x2x32xf32>
    %cst_14 = arith.constant dense<0xFF800000> : vector<2x8x32xf32>
    %61 = vector.multi_reduction <maximumf>, %60, %cst_14 [2] : vector<2x8x2x32xf32> to vector<2x8x32xf32>
    %c0_15 = arith.constant 0 : index
    %c0_16 = arith.constant 0 : index
    %c0_17 = arith.constant 0 : index
    %62 = vector.load %arg3[%c0_15, %c0_16, %c0_17] : memref<1x1x32xf32, #tpu.memory_space<vmem>>, vector<1x1x32xf32>
    %63 = vector.broadcast %62 : vector<1x1x32xf32> to vector<2x8x32xf32>
    %64 = arith.addf %61, %63 : vector<2x8x32xf32>
    %cst_18 = arith.constant 0.000000e+00 : f32
    %65 = vector.broadcast %cst_18 : f32 to vector<2x8x32xf32>
    %66 = arith.maximumf %64, %65 : vector<2x8x32xf32>
    %cst_19 = arith.constant 0.000000e+00 : f32
    %67 = vector.broadcast %cst_19 : f32 to vector<2x1x32xf32>
    %cst_20 = arith.constant 0.000000e+00 : f32
    %68 = vector.broadcast %cst_20 : f32 to vector<2x2x32xf32>
    %69 = tpu.concatenate %67, %66, %68 in 1 : vector<2x1x32xf32>, vector<2x8x32xf32>, vector<2x2x32xf32> -> vector<2x11x32xf32>
    %c0_21 = arith.constant 0 : index
    %c0_22 = arith.constant 0 : index
    %c0_23 = arith.constant 0 : index
    %70 = vector.load %arg4[%c0_21, %c0_22, %c0_23] : memref<4x32x16xbf16, #tpu.memory_space<vmem>>, vector<4x32x16xbf16>
    %71 = vector.extract_strided_slice %69 {offsets = [0, 0, 0], sizes = [2, 8, 32], strides = [1, 1, 1]} : vector<2x11x32xf32> to vector<2x8x32xf32>
    %72 = vector.shape_cast %71 : vector<2x8x32xf32> to vector<16x32xf32>
    %73 = arith.truncf %72 : vector<16x32xf32> to vector<16x32xbf16>
    %74 = vector.extract_strided_slice %70 {offsets = [0, 0, 0], sizes = [1, 32, 16], strides = [1, 1, 1]} : vector<4x32x16xbf16> to vector<1x32x16xbf16>
    %75 = vector.shape_cast %74 : vector<1x32x16xbf16> to vector<32x16xbf16>
    %cst_24 = arith.constant dense<0.000000e+00> : vector<16x16xf32>
    %76 = tpu.matmul %73, %75, %cst_24 {dimension_numbers = #tpu.dot_dimension_numbers<[1], [0], [0], [1], [0, 0, 1, 1], [], []>} : vector<16x32xbf16>, vector<32x16xbf16>, vector<16x16xf32> -> vector<16x16xf32>
    %77 = vector.extract_strided_slice %69 {offsets = [0, 1, 0], sizes = [2, 8, 32], strides = [1, 1, 1]} : vector<2x11x32xf32> to vector<2x8x32xf32>
    %78 = vector.shape_cast %77 : vector<2x8x32xf32> to vector<16x32xf32>
    %79 = arith.truncf %78 : vector<16x32xf32> to vector<16x32xbf16>
    %80 = vector.extract_strided_slice %70 {offsets = [1, 0, 0], sizes = [1, 32, 16], strides = [1, 1, 1]} : vector<4x32x16xbf16> to vector<1x32x16xbf16>
    %81 = vector.shape_cast %80 : vector<1x32x16xbf16> to vector<32x16xbf16>
    %cst_25 = arith.constant dense<0.000000e+00> : vector<16x16xf32>
    %82 = tpu.matmul %79, %81, %cst_25 {dimension_numbers = #tpu.dot_dimension_numbers<[1], [0], [0], [1], [0, 0, 1, 1], [], []>} : vector<16x32xbf16>, vector<32x16xbf16>, vector<16x16xf32> -> vector<16x16xf32>
    %83 = arith.addf %76, %82 : vector<16x16xf32>
    %84 = vector.extract_strided_slice %69 {offsets = [0, 2, 0], sizes = [2, 8, 32], strides = [1, 1, 1]} : vector<2x11x32xf32> to vector<2x8x32xf32>
    %85 = vector.shape_cast %84 : vector<2x8x32xf32> to vector<16x32xf32>
    %86 = arith.truncf %85 : vector<16x32xf32> to vector<16x32xbf16>
    %87 = vector.extract_strided_slice %70 {offsets = [2, 0, 0], sizes = [1, 32, 16], strides = [1, 1, 1]} : vector<4x32x16xbf16> to vector<1x32x16xbf16>
    %88 = vector.shape_cast %87 : vector<1x32x16xbf16> to vector<32x16xbf16>
    %cst_26 = arith.constant dense<0.000000e+00> : vector<16x16xf32>
    %89 = tpu.matmul %86, %88, %cst_26 {dimension_numbers = #tpu.dot_dimension_numbers<[1], [0], [0], [1], [0, 0, 1, 1], [], []>} : vector<16x32xbf16>, vector<32x16xbf16>, vector<16x16xf32> -> vector<16x16xf32>
    %90 = arith.addf %83, %89 : vector<16x16xf32>
    %91 = vector.extract_strided_slice %69 {offsets = [0, 3, 0], sizes = [2, 8, 32], strides = [1, 1, 1]} : vector<2x11x32xf32> to vector<2x8x32xf32>
    %92 = vector.shape_cast %91 : vector<2x8x32xf32> to vector<16x32xf32>
    %93 = arith.truncf %92 : vector<16x32xf32> to vector<16x32xbf16>
    %94 = vector.extract_strided_slice %70 {offsets = [3, 0, 0], sizes = [1, 32, 16], strides = [1, 1, 1]} : vector<4x32x16xbf16> to vector<1x32x16xbf16>
    %95 = vector.shape_cast %94 : vector<1x32x16xbf16> to vector<32x16xbf16>
    %cst_27 = arith.constant dense<0.000000e+00> : vector<16x16xf32>
    %96 = tpu.matmul %93, %95, %cst_27 {dimension_numbers = #tpu.dot_dimension_numbers<[1], [0], [0], [1], [0, 0, 1, 1], [], []>} : vector<16x32xbf16>, vector<32x16xbf16>, vector<16x16xf32> -> vector<16x16xf32>
    %97 = arith.addf %90, %96 : vector<16x16xf32>
    %98 = vector.shape_cast %97 : vector<16x16xf32> to vector<2x4x2x16xf32>
    %cst_28 = arith.constant dense<0xFF800000> : vector<2x4x16xf32>
    %99 = vector.multi_reduction <maximumf>, %98, %cst_28 [2] : vector<2x4x2x16xf32> to vector<2x4x16xf32>
    %c0_29 = arith.constant 0 : index
    %c0_30 = arith.constant 0 : index
    %c0_31 = arith.constant 0 : index
    %100 = vector.load %arg5[%c0_29, %c0_30, %c0_31] : memref<1x1x16xf32, #tpu.memory_space<vmem>>, vector<1x1x16xf32>
    %101 = vector.broadcast %100 : vector<1x1x16xf32> to vector<2x4x16xf32>
    %102 = arith.addf %99, %101 : vector<2x4x16xf32>
    %cst_32 = arith.constant 0.000000e+00 : f32
    %103 = vector.broadcast %cst_32 : f32 to vector<2x4x16xf32>
    %104 = arith.maximumf %102, %103 : vector<2x4x16xf32>
    %cst_33 = arith.constant 0.000000e+00 : f32
    %105 = vector.broadcast %cst_33 : f32 to vector<2x1x16xf32>
    %106 = tpu.concatenate %104, %105 in 1 : vector<2x4x16xf32>, vector<2x1x16xf32> -> vector<2x5x16xf32>
    %c0_34 = arith.constant 0 : index
    %c0_35 = arith.constant 0 : index
    %c0_36 = arith.constant 0 : index
    %107 = vector.load %arg6[%c0_34, %c0_35, %c0_36] : memref<2x16x8xbf16, #tpu.memory_space<vmem>>, vector<2x16x8xbf16>
    %108 = vector.extract_strided_slice %106 {offsets = [0, 0, 0], sizes = [2, 4, 16], strides = [1, 1, 1]} : vector<2x5x16xf32> to vector<2x4x16xf32>
    %109 = vector.shape_cast %108 : vector<2x4x16xf32> to vector<8x16xf32>
    %110 = arith.truncf %109 : vector<8x16xf32> to vector<8x16xbf16>
    %111 = vector.extract_strided_slice %107 {offsets = [0, 0, 0], sizes = [1, 16, 8], strides = [1, 1, 1]} : vector<2x16x8xbf16> to vector<1x16x8xbf16>
    %112 = vector.shape_cast %111 : vector<1x16x8xbf16> to vector<16x8xbf16>
    %cst_37 = arith.constant dense<0.000000e+00> : vector<8x8xf32>
    %113 = tpu.matmul %110, %112, %cst_37 {dimension_numbers = #tpu.dot_dimension_numbers<[1], [0], [0], [1], [0, 0, 1, 1], [], []>} : vector<8x16xbf16>, vector<16x8xbf16>, vector<8x8xf32> -> vector<8x8xf32>
    %114 = vector.extract_strided_slice %106 {offsets = [0, 1, 0], sizes = [2, 4, 16], strides = [1, 1, 1]} : vector<2x5x16xf32> to vector<2x4x16xf32>
    %115 = vector.shape_cast %114 : vector<2x4x16xf32> to vector<8x16xf32>
    %116 = arith.truncf %115 : vector<8x16xf32> to vector<8x16xbf16>
    %117 = vector.extract_strided_slice %107 {offsets = [1, 0, 0], sizes = [1, 16, 8], strides = [1, 1, 1]} : vector<2x16x8xbf16> to vector<1x16x8xbf16>
    %118 = vector.shape_cast %117 : vector<1x16x8xbf16> to vector<16x8xbf16>
    %cst_38 = arith.constant dense<0.000000e+00> : vector<8x8xf32>
    %119 = tpu.matmul %116, %118, %cst_38 {dimension_numbers = #tpu.dot_dimension_numbers<[1], [0], [0], [1], [0, 0, 1, 1], [], []>} : vector<8x16xbf16>, vector<16x8xbf16>, vector<8x8xf32> -> vector<8x8xf32>
    %120 = arith.addf %113, %119 : vector<8x8xf32>
    %121 = vector.shape_cast %120 : vector<8x8xf32> to vector<2x2x2x8xf32>
    %cst_39 = arith.constant dense<0xFF800000> : vector<2x2x8xf32>
    %122 = vector.multi_reduction <maximumf>, %121, %cst_39 [2] : vector<2x2x2x8xf32> to vector<2x2x8xf32>
    %c0_40 = arith.constant 0 : index
    %c0_41 = arith.constant 0 : index
    %c0_42 = arith.constant 0 : index
    %123 = vector.load %arg7[%c0_40, %c0_41, %c0_42] : memref<1x1x8xf32, #tpu.memory_space<vmem>>, vector<1x1x8xf32>
    %124 = vector.broadcast %123 : vector<1x1x8xf32> to vector<2x2x8xf32>
    %125 = arith.addf %122, %124 : vector<2x2x8xf32>
    %cst_43 = arith.constant 0.000000e+00 : f32
    %126 = vector.broadcast %cst_43 : f32 to vector<2x2x8xf32>
    %127 = arith.maximumf %125, %126 : vector<2x2x8xf32>
    %cst_44 = arith.constant dense<0.000000e+00> : vector<2x8xf32>
    %128 = vector.multi_reduction <add>, %127, %cst_44 [1] : vector<2x2x8xf32> to vector<2x8xf32>
    %cst_45 = arith.constant 2.000000e+00 : f32
    %129 = vector.broadcast %cst_45 : f32 to vector<2x8xf32>
    %130 = arith.divf %128, %129 : vector<2x8xf32>
    %131 = arith.truncf %130 : vector<2x8xf32> to vector<2x8xbf16>
    %c0_46 = arith.constant 0 : index
    %c0_47 = arith.constant 0 : index
    %132 = vector.load %arg8[%c0_46, %c0_47] : memref<8x4xbf16, #tpu.memory_space<vmem>>, vector<8x4xbf16>
    %cst_48 = arith.constant dense<0.000000e+00> : vector<2x4xf32>
    %133 = tpu.matmul %131, %132, %cst_48 {dimension_numbers = #tpu.dot_dimension_numbers<[1], [0], [0], [1], [0, 0, 1, 1], [], []>} : vector<2x8xbf16>, vector<8x4xbf16>, vector<2x4xf32> -> vector<2x4xf32>
    %c0_49 = arith.constant 0 : index
    %c0_50 = arith.constant 0 : index
    %134 = vector.load %arg9[%c0_49, %c0_50] : memref<1x4xf32, #tpu.memory_space<vmem>>, vector<1x4xf32>
    %135 = vector.broadcast %134 : vector<1x4xf32> to vector<2x4xf32>
    %136 = arith.addf %133, %135 : vector<2x4xf32>
    %cst_51 = arith.constant 0.000000e+00 : f32
    %137 = vector.broadcast %cst_51 : f32 to vector<2x4xf32>
    %138 = arith.maximumf %136, %137 : vector<2x4xf32>
    %139 = arith.truncf %138 : vector<2x4xf32> to vector<2x4xbf16>
    %c0_52 = arith.constant 0 : index
    %c0_53 = arith.constant 0 : index
    %140 = vector.load %arg10[%c0_52, %c0_53] : memref<4x3xbf16, #tpu.memory_space<vmem>>, vector<4x3xbf16>
    %cst_54 = arith.constant dense<0.000000e+00> : vector<2x3xf32>
    %141 = tpu.matmul %139, %140, %cst_54 {dimension_numbers = #tpu.dot_dimension_numbers<[1], [0], [0], [1], [0, 0, 1, 1], [], []>} : vector<2x4xbf16>, vector<4x3xbf16>, vector<2x3xf32> -> vector<2x3xf32>
    %c0_55 = arith.constant 0 : index
    %c0_56 = arith.constant 0 : index
    %142 = vector.load %arg11[%c0_55, %c0_56] : memref<1x3xf32, #tpu.memory_space<vmem>>, vector<1x3xf32>
    %143 = vector.broadcast %142 : vector<1x3xf32> to vector<2x3xf32>
    %144 = arith.addf %141, %143 : vector<2x3xf32>
    %cst_57 = arith.constant dense<0xFF800000> : vector<2xf32>
    %145 = vector.multi_reduction <maximumf>, %144, %cst_57 [1] : vector<2x3xf32> to vector<2xf32>
    %146 = vector.shape_cast %145 : vector<2xf32> to vector<2x1xf32>
    %147 = vector.broadcast %146 : vector<2x1xf32> to vector<2x3xf32>
    %148 = arith.subf %144, %147 : vector<2x3xf32>
    %149 = math.exp %148 : vector<2x3xf32>
    %cst_58 = arith.constant dense<0.000000e+00> : vector<2xf32>
    %150 = vector.multi_reduction <add>, %149, %cst_58 [1] : vector<2x3xf32> to vector<2xf32>
    %151 = vector.shape_cast %150 : vector<2xf32> to vector<2x1xf32>
    %152 = vector.broadcast %151 : vector<2x1xf32> to vector<2x3xf32>
    %153 = arith.divf %149, %152 : vector<2x3xf32>
    %c0_59 = arith.constant 0 : index
    %c0_60 = arith.constant 0 : index
    %154 = vector.load %arg12[%c0_59, %c0_60] : memref<2x3xf32, #tpu.memory_space<vmem>>, vector<2x3xf32>
    tpu.vector_store %arg12[%c0_59, %c0_60], %153 {strides = array<i32>} : memref<2x3xf32, #tpu.memory_space<vmem>>, vector<2x3xf32>,
    return
  }
  func.func @transform_0(%arg0: i32) -> (i32, i32, i32) {
    %c0_i32 = arith.constant 0 : i32
    %c0_i32_0 = arith.constant 0 : i32
    %c0_i32_1 = arith.constant 0 : i32
    return %arg0, %c0_i32, %c0_i32_0 : i32, i32, i32
  }
  func.func @transform_1(%arg0: i32) -> (i32, i32, i32) {
    %c0_i32 = arith.constant 0 : i32
    %c0_i32_0 = arith.constant 0 : i32
    %c0_i32_1 = arith.constant 0 : i32
    %c0_i32_2 = arith.constant 0 : i32
    return %c0_i32, %c0_i32_0, %c0_i32_1 : i32, i32, i32
  }
  func.func @transform_2(%arg0: i32) -> (i32, i32, i32) {
    %c0_i32 = arith.constant 0 : i32
    %c0_i32_0 = arith.constant 0 : i32
    %c0_i32_1 = arith.constant 0 : i32
    %c0_i32_2 = arith.constant 0 : i32
    return %c0_i32, %c0_i32_0, %c0_i32_1 : i32, i32, i32
  }
  func.func @transform_3(%arg0: i32) -> (i32, i32, i32) {
    %c0_i32 = arith.constant 0 : i32
    %c0_i32_0 = arith.constant 0 : i32
    %c0_i32_1 = arith.constant 0 : i32
    %c0_i32_2 = arith.constant 0 : i32
    return %c0_i32, %c0_i32_0, %c0_i32_1 : i32, i32, i32
  }
  func.func @transform_4(%arg0: i32) -> (i32, i32, i32) {
    %c0_i32 = arith.constant 0 : i32
    %c0_i32_0 = arith.constant 0 : i32
    %c0_i32_1 = arith.constant 0 : i32
    %c0_i32_2 = arith.constant 0 : i32
    return %c0_i32, %c0_i32_0, %c0_i32_1 : i32, i32, i32
  }
  func.func @transform_5(%arg0: i32) -> (i32, i32, i32) {
    %c0_i32 = arith.constant 0 : i32
    %c0_i32_0 = arith.constant 0 : i32
    %c0_i32_1 = arith.constant 0 : i32
    %c0_i32_2 = arith.constant 0 : i32
    return %c0_i32, %c0_i32_0, %c0_i32_1 : i32, i32, i32
  }
  func.func @transform_6(%arg0: i32) -> (i32, i32, i32) {
    %c0_i32 = arith.constant 0 : i32
    %c0_i32_0 = arith.constant 0 : i32
    %c0_i32_1 = arith.constant 0 : i32
    %c0_i32_2 = arith.constant 0 : i32
    return %c0_i32, %c0_i32_0, %c0_i32_1 : i32, i32, i32
  }
  func.func @transform_7(%arg0: i32) -> (i32, i32) {
    %c0_i32 = arith.constant 0 : i32
    %c0_i32_0 = arith.constant 0 : i32
    %c0_i32_1 = arith.constant 0 : i32
    return %c0_i32, %c0_i32_0 : i32, i32
  }
  func.func @transform_8(%arg0: i32) -> (i32, i32) {
    %c0_i32 = arith.constant 0 : i32
    %c0_i32_0 = arith.constant 0 : i32
    %c0_i32_1 = arith.constant 0 : i32
    return %c0_i32, %c0_i32_0 : i32, i32
  }
  func.func @transform_9(%arg0: i32) -> (i32, i32) {
    %c0_i32 = arith.constant 0 : i32
    %c0_i32_0 = arith.constant 0 : i32
    %c0_i32_1 = arith.constant 0 : i32
    return %c0_i32, %c0_i32_0 : i32, i32
  }
  func.func @transform_10(%arg0: i32) -> (i32, i32) {
    %c0_i32 = arith.constant 0 : i32
    %c0_i32_0 = arith.constant 0 : i32
    %c0_i32_1 = arith.constant 0 : i32
    return %c0_i32, %c0_i32_0 : i32, i32
  }
  func.func @transform_11(%arg0: i32) -> (i32, i32) {
    %c0_i32 = arith.constant 0 : i32
    %c0_i32_0 = arith.constant 0 : i32
    return %arg0, %c0_i32 : i32, i32
  }
}

</mosaic_0001>

<bundles_post_ra>
// kernel: forward.1
= control target key start
LH: loop header
LB: loop body
LE: loop exit
PB: predicated region body
PF: predicated region fallthrough
CT: control target
= control target key end

     0   :  { %vm103_vm0 = vcmask 1041408   ;;  %vm48_vm1 = vcmask 1042432   ;;  %vm96_vm2 = vcmask 31744   ;;  %vm79_vm3 = vcmask 1046528   ;;  %s1707_s0 = inlined_call_operand.vmem [shape: f32[2,16,4], index: 0, kind: input, shape index: {}]   ;;  %s1708_s1 = inlined_call_operand.vmem [shape: bf16[8,4,32], index: 1, kind: input, shape index: {}]   ;;  %s1709_s2 = inlined_call_operand.vmem [shape: f32[1,1,32], index: 2, kind: input, shape index: {}]   ;;  %s1710_s3 = inlined_call_operand.vmem [shape: bf16[4,32,16], index: 3, kind: input, shape index: {}]   ;;  %s1711_s4 = inlined_call_operand.vmem [shape: f32[1,1,16], index: 4, kind: input, shape index: {}]   ;;  %s1712_s5 = inlined_call_operand.vmem [shape: bf16[2,16,8], index: 5, kind: input, shape index: {}]   ;;  %s1713_s6 = inlined_call_operand.vmem [shape: f32[1,1,8], index: 6, kind: input, shape index: {}]   ;;  %s1714_s7 = inlined_call_operand.vmem [shape: bf16[8,4], index: 7, kind: input, shape index: {}]   ;;  %s1715_s8 = inlined_call_operand.vmem [shape: f32[1,4], index: 8, kind: input, shape index: {}]   ;;  %s1716_s9 = inlined_call_operand.vmem [shape: bf16[4,3], index: 9, kind: input, shape index: {}]   ;;  %s1717_s10 = inlined_call_operand.vmem [shape: f32[1,3], index: 10, kind: input, shape index: {}]   ;;  %s1718_s11 = inlined_call_operand.hbm [shape: f32[2,3], index: 11, kind: output, shape index: {}]  }
   0x1   :  { %v65_v0 = vld [vmem:[%s1708_s1] sm:$0x3]  ;;  %v66_v1 = vld [vmem:[%s1708_s1 + $0x2] sm:$0x3]  ;;  %v41_v5 = vld [vmem:[%s1707_s0 + $0x8] sm:$0xff]  ;;  %vm154_vm4 = vcmask 1045504  }
   0x2   :  { %v40_v2 = vld [vmem:[%s1707_s0] sm:$0xff]  ;;  %v133_v3 = vsel %vm103_vm0, %v65_v0, 0  ;;  %v105_v4 = vsel %vm103_vm0, %v66_v1, 0  ;;  %v50_v7 = vrot.slane %v41_v5, 5  ;;  %v71_v13 = vld [vmem:[%s1708_s1 + $0xc] sm:$0x3] }
   0x3   :  { %v49_v6 = vrot.slane %v40_v2, 5  ;;  %142 = vmatpush.bf16.msra.mxu1 %v133_v3  ;;  %114 = vmatpush.bf16.msra.mxu0 %v105_v4  ;;  %v67_v8 = vld [vmem:[%s1708_s1 + $0x4] sm:$0x3]  ;;  %v68_v9 = vld [vmem:[%s1708_s1 + $0x6] sm:$0x3]  ;;  %v42_v23 = vld [vmem:[%s1707_s0 + $0x10] sm:$0xff] }
   0x4   :  { %v178_v11 = vsel %vm103_vm0, %v67_v8, 0  ;;  %v227_v12 = vsel %vm103_vm0, %v68_v9, 0  ;;  %v1433_v15 = vsel %vm48_vm1, %v50_v7, 0.0  ;;  %v69_v17 = vld [vmem:[%s1708_s1 + $0x8] sm:$0x3]  ;;  %vm203_vm5 = vcmask 1044480  }
   0x5   :  { %v1422_v10 = vsel %vm48_vm1, 0.0, %v49_v6  ;;  %v1430_v14 = vsel %vm48_vm1, %v49_v6, %v50_v7  ;;  %187 = vmatpush.bf16.msra.mxu2 %v178_v11  ;;  %236 = vmatpush.bf16.msra.mxu3 %v227_v12  ;;  %v83_v20 = vrot.slane %v1433_v15, 1  ;;  %v72_v22 = vld [vmem:[%s1708_s1 + $0xe] sm:$0x3]  ;;  %v158_v25 = vrot.slane %v1433_v15, 2  ;;  %v43_v36 = vld [vmem:[%s1707_s0 + $0x18] sm:$0xff] }
   0x6   :  { %v80_v16 = vrot.slane %v1422_v10, 1  ;;  %v73_v18 = vpack.c.bf16 %v1430_v14, %v1422_v10  ;;  %v81_v19 = vrot.slane %v1430_v14, 1  ;;  %v155_v21 = vrot.slane %v1422_v10, 2  ;;  %v70_v27 = vld [vmem:[%s1708_s1 + $0xa] sm:$0x3] }
   0x7   :  { %v156_v24 = vrot.slane %v1430_v14, 2  ;;  %v204_v26 = vrot.slane %v1422_v10, 3  ;;  %v205_v30 = vrot.slane %v1430_v14, 3  ;;  %v207_v31 = vrot.slane %v1433_v15, 3 }
   0x8   :  { %1224 = vmatmul.msk.bf16.vlgmr.msra.gmra.mxu1 %vm96_vm2, %v73_v18  ;;  %v82_v28 = vsel %vm79_vm3, %v80_v16, %v81_v19  ;;  %v84_v29 = vsel %vm79_vm3, %v81_v19, %v83_v20  ;;  %v372_v35 = vsel %vm103_vm0, %v71_v13, 0  ;;  %v276_v40 = vsel %vm103_vm0, %v69_v17, 0 }
   0x9   :  { %v94_v32 = vpack.c.bf16 %v84_v29, %v82_v28  ;;  %v157_v33 = vsel %vm154_vm4, %v155_v21, %v156_v24  ;;  %v159_v34 = vsel %vm154_vm4, %v156_v24, %v158_v25  ;;  %v206_v38 = vsel %vm203_vm5, %v204_v26, %v205_v30  ;;  %381 = vmatpush.bf16.msrb.mxu2 %v372_v35 }
   0xa   :  { %v169_v37 = vpack.c.bf16 %v159_v34, %v157_v33  ;;  %v208_v39 = vsel %vm203_vm5, %v205_v30, %v207_v31 }
   0xb   :  { %16 = vsyncpa [#allocation3], 0  ;;  %1222 = vmatmul.msk.bf16.vlgmr.msra.gmra.mxu0 %vm96_vm2, %v94_v32  ;;  %v218_v41 = vpack.c.bf16 %v208_v39, %v206_v38  ;;  %v421_v42 = vsel %vm103_vm0, %v72_v22, 0  ;;  %v324_v43 = vsel %vm103_vm0, %v70_v27, 0  ;;  %v52_v44 = vrot.slane %v42_v23, 5  ;;  %s1213_s27 = sshll.u32 %s1718_s11, 4  ;;  %s1214_s27 = int_to_ptr.hbm [resolvable:$true] %s1213_s27 }
   0xc   :  { %1226 = vmatmul.msk.bf16.vlgmr.msra.gmra.mxu2 %vm96_vm2, %v169_v37  ;;  %285 = vmatpush.bf16.msrb.mxu0 %v276_v40  ;;  %v53_v45 = vrot.slane %v43_v36, 5  ;;  %v301_v4 = vrot.slane %v1422_v10, 5  ;;  %v302_v5 = vrot.slane %v1430_v14, 5  ;;  %v304_v6 = vrot.slane %v1433_v15, 5 }
   0xd   :  { %1228 = vmatmul.msk.bf16.vlgmr.msra.gmra.mxu3 %vm96_vm2, %v218_v41  ;;  %333 = vmatpush.bf16.msrb.mxu1 %v324_v43  ;;  %v1476_v46 = vsel %vm48_vm1, 0.0, %v52_v44  ;;  %vm252_vm6 = vcmask 1043456   ;;  %v253_v8 = vrot.slane %v1422_v10, 4  ;;  %v254_v9 = vrot.slane %v1430_v14, 4 }
   0xe   :  { %430 = vmatpush.bf16.msrb.mxu3 %v421_v42  ;;  %v1479_v47 = vsel %vm48_vm1, %v52_v44, %v53_v45  ;;  %v1482_v48 = vsel %vm48_vm1, %v53_v45, 0.0  ;;  %v85_v49 = vrot.slane %v1476_v46, 1  ;;  %v160_v52 = vrot.slane %v1476_v46, 2 }
   0xf   :  { %v86_v50 = vrot.slane %v1479_v47, 1  ;;  %v88_v51 = vrot.slane %v1482_v48, 1  ;;  %v161_v53 = vrot.slane %v1479_v47, 2  ;;  %v163_v54 = vrot.slane %v1482_v48, 2 }
  0x10   :  { %v209_v55 = vrot.slane %v1476_v46, 3  ;;  %v210_v56 = vrot.slane %v1479_v47, 3  ;;  %v212_v57 = vrot.slane %v1482_v48, 3  ;;  %v74_v58 = vpack.c.bf16 %v1479_v47, %v1476_v46 }
  0x11   :  { %v87_v59 = vsel %vm79_vm3, %v85_v49, %v86_v50  ;;  %v89_v60 = vsel %vm79_vm3, %v86_v50, %v88_v51  ;;  %v162_v61 = vsel %vm154_vm4, %v160_v52, %v161_v53  ;;  %v164_v62 = vsel %vm154_vm4, %v161_v53, %v163_v54 }
  0x12   :  { %v211_v63 = vsel %vm203_vm5, %v209_v55, %v210_v56  ;;  %v213_v0 = vsel %vm203_vm5, %v210_v56, %v212_v57  ;;  %v95_v1 = vpack.c.bf16 %v89_v60, %v87_v59  ;;  %v170_v2 = vpack.c.bf16 %v164_v62, %v162_v61 }
  0x13   :  { %v219_v3 = vpack.c.bf16 %v213_v0, %v211_v63  ;;  %v303_v7 = vsel %vm48_vm1, %v301_v4, %v302_v5  ;;  %v256_v11 = vrot.slane %v1433_v15, 4  ;;  %v305_v12 = vsel %vm48_vm1, %v302_v5, %v304_v6 }
  0x14   :  { %v349_v13 = vrot.slane %v1422_v10, 6  ;;  %v350_v16 = vrot.slane %v1430_v14, 6  ;;  %v352_v17 = vrot.slane %v1433_v15, 6  ;;  %v398_v18 = vrot.slane %v1422_v10, 7 }
  0x15   :  { %v399_v19 = vrot.slane %v1430_v14, 7  ;;  %v401_v20 = vrot.slane %v1433_v15, 7  ;;  %vm397_vm7 = vcmask 1040384   ;;  %v315_v21 = vpack.c.bf16 %v305_v12, %v303_v7 }
  0x16   :  { %v255_v22 = vsel %vm252_vm6, %v253_v8, %v254_v9  ;;  %v257_v23 = vsel %vm252_vm6, %v254_v9, %v256_v11  ;;  %v351_v24 = vsel %vm103_vm0, %v349_v13, %v350_v16  ;;  %v353_v25 = vsel %vm103_vm0, %v350_v16, %v352_v17 }
  0x17   :  { %v400_v26 = vsel %vm397_vm7, %v398_v18, %v399_v19  ;;  %v402_v27 = vsel %vm397_vm7, %v399_v19, %v401_v20  ;;  %v267_v28 = vpack.c.bf16 %v257_v23, %v255_v22  ;;  %v363_v10 = vpack.c.bf16 %v353_v25, %v351_v24 }
  0x18   :  { %1225 = vmatmul.msk.bf16.gmra.mxu1 %vm96_vm2, %v74_v58  ;;  %v412_v14 = vpack.c.bf16 %v402_v27, %v400_v26  ;;  %v306_v15 = vrot.slane %v1476_v46, 5  ;;  %v307_v29 = vrot.slane %v1479_v47, 5  ;;  %v309_v30 = vrot.slane %v1482_v48, 5 }
  0x19   :  { %v258_v32 = vrot.slane %v1476_v46, 4  ;;  %v259_v33 = vrot.slane %v1479_v47, 4  ;;  %v261_v34 = vrot.slane %v1482_v48, 4  ;;  %v354_v36 = vrot.slane %v1476_v46, 6 }
  0x1a   :  { %v308_v31 = vsel %vm48_vm1, %v306_v15, %v307_v29  ;;  %v310_v35 = vsel %vm48_vm1, %v307_v29, %v309_v30  ;;  %v355_v37 = vrot.slane %v1479_v47, 6  ;;  %v357_v38 = vrot.slane %v1482_v48, 6 }
  0x1b   :  { %1223 = vmatmul.msk.bf16.gmra.mxu0 %vm96_vm2, %v95_v1  ;;  %v403_v39 = vrot.slane %v1476_v46, 7  ;;  %v404_v40 = vrot.slane %v1479_v47, 7  ;;  %v406_v41 = vrot.slane %v1482_v48, 7  ;;  %v316_v42 = vpack.c.bf16 %v310_v35, %v308_v31 }
  0x1c   :  { %1227 = vmatmul.msk.bf16.gmra.mxu2 %vm96_vm2, %v170_v2  ;;  %v260_v43 = vsel %vm252_vm6, %v258_v32, %v259_v33  ;;  %v262_v44 = vsel %vm252_vm6, %v259_v33, %v261_v34  ;;  %v356_v45 = vsel %vm103_vm0, %v354_v36, %v355_v37  ;;  %v358_v49 = vsel %vm103_vm0, %v355_v37, %v357_v38 }
  0x1d   :  { %1229 = vmatmul.msk.bf16.gmra.mxu3 %vm96_vm2, %v219_v3  ;;  %v405_v50 = vsel %vm397_vm7, %v403_v39, %v404_v40  ;;  %v407_v51 = vsel %vm397_vm7, %v404_v40, %v406_v41  ;;  %v268_v52 = vpack.c.bf16 %v262_v44, %v260_v43  ;;  %v364_v46 = vpack.c.bf16 %v358_v49, %v356_v45 }
  0x1e   :  { %v413_v47 = vpack.c.bf16 %v407_v51, %v405_v50  ;;  %vm474_vm8 = vcmask 254976   ;;  %vm641_vm9 = vcmask 1042434   ;;  %vm644_vm10 = vcmask 1043459  }
  0x1f   :  { %vm647_vm11 = vcmask 1044484   ;;  %vm650_vm12 = vcmask 1045509   ;;  %vm653_vm13 = vcmask 1046534   ;;  %vm656_vm14 = vcmask 1047559  }
  0x20   :  { %vm721_vm15 = vcmask 261120   ;;  %vm862_vm1 = vcmask 123904  }
  0x28   :  { %1232 = vmatmul.msk.bf16.vlgmr.msrb.gmra.mxu1 %vm96_vm2, %v315_v21 }
  0x2b   :  { %1230 = vmatmul.msk.bf16.vlgmr.msrb.gmra.mxu0 %vm96_vm2, %v267_v28 }
  0x2c   :  { %1234 = vmatmul.msk.bf16.vlgmr.msrb.gmra.mxu2 %vm96_vm2, %v363_v10 }
  0x2d   :  { %1236 = vmatmul.msk.bf16.vlgmr.msrb.gmra.mxu3 %vm96_vm2, %v412_v14 }
  0x38   :  { %1233 = vmatmul.msk.bf16.gmra.mxu1 %vm96_vm2, %v316_v42 }
  0x3b   :  { %1231 = vmatmul.msk.bf16.gmra.mxu0 %vm96_vm2, %v268_v52 }
  0x3c   :  { %1235 = vmatmul.msk.bf16.gmra.mxu2 %vm96_vm2, %v364_v46 }
  0x3d   :  { %1237 = vmatmul.msk.bf16.gmra.mxu3 %vm96_vm2, %v413_v47 }
  0x85   :  { %v144_v48 = vpop.f32.mrf.mxu1 }
  0x88   :  { %v116_v53 = vpop.f32.mrf.mxu0 }
  0x89   :  { %v145_v2 = vadd.f32 %v144_v48, %v116_v53 }
  0x8d   :  { %v146_v54 = vpop.f32.mrf.mxu1 }
  0x8f   :  { %v189_v55 = vpop.f32.mrf.mxu2 }
  0x90   :  { %v238_v56 = vpop.f32.mrf.mxu3  ;;  %v118_v57 = vpop.f32.mrf.mxu0  ;;  %v199_v3 = vadd.f32 %v189_v55, %v145_v2 }
  0x91   :  { %v147_v8 = vadd.f32 %v146_v54, %v118_v57 }
  0x92   :  { %v248_v5 = vadd.f32 %v238_v56, %v199_v3 }
  0x95   :  { %v149_v58 = vpop.f32.mrf.mxu1 }
  0x97   :  { %v191_v59 = vpop.f32.mrf.mxu2 }
  0x98   :  { %v240_v60 = vpop.f32.mrf.mxu3  ;;  %v121_v61 = vpop.f32.mrf.mxu0  ;;  %v200_v12 = vadd.f32 %v191_v59, %v147_v8 }
  0x99   :  { %v150_v21 = vadd.f32 %v149_v58, %v121_v61  ;;  %v1563_v61 = vld [vmem:[%s1709_s2] ss:$0 sm:$0xff] }
  0x9a   :  { %v249_v17 = vadd.f32 %v240_v60, %v200_v12 }
  0x9d   :  { %v151_v1 = vpop.f32.mrf.mxu1 }
  0x9f   :  { %v194_v62 = vpop.f32.mrf.mxu2 }
  0xa0   :  { %v243_v63 = vpop.f32.mrf.mxu3  ;;  %v123_v0 = vpop.f32.mrf.mxu0  ;;  %v201_v24 = vadd.f32 %v194_v62, %v150_v21 }
  0xa1   :  { %v152_v38 = vadd.f32 %v151_v1, %v123_v0 }
  0xa2   :  { %v250_v37 = vadd.f32 %v243_v63, %v201_v24 }
  0xa5   :  { %v335_v11 = vpop.f32.mrf.mxu1 }
  0xa7   :  { %v196_v4 = vpop.f32.mrf.mxu2 }
  0xa8   :  { %v1553_v6 = vpop.f32.mrf.mxu3  ;;  %v287_v7 = vpop.f32.mrf.mxu0  ;;  %v202_v49 = vadd.f32 %v196_v4, %v152_v38 }
  0xa9   :  { %v297_v9 = vadd.f32 %v287_v7, %v248_v5 }
  0xab   :  { %v345_v13 = vadd.f32 %v335_v11, %v297_v9 }
  0xad   :  { %v337_v10 = vpop.f32.mrf.mxu1 }
  0xaf   :  { %v383_v16 = vpop.f32.mrf.mxu2 }
  0xb0   :  { %v393_v18 = vadd.f32 %v383_v16, %v345_v13  ;;  %v432_v19 = vpop.f32.mrf.mxu3  ;;  %v289_v20 = vpop.f32.mrf.mxu0 }
  0xb1   :  { %v298_v23 = vadd.f32 %v289_v20, %v249_v17 }
  0xb2   :  { %v442_v22 = vadd.f32 %v432_v19, %v393_v18 }
  0xb3   :  { %v346_v31 = vadd.f32 %v337_v10, %v298_v23 }
  0xb4   :  { %v450_v25 = vrot.slane %v442_v22, 2  ;;  %v451_v26 = vrot.slane %v442_v22, 4  ;;  %v452_v27 = vrot.slane %v442_v22, 6  ;;  %v475_v28 = vsel %vm474_vm8, %v442_v22, -inf }
  0xb5   :  { %v476_v14 = vrot.slane %v475_v28, 4 }
  0xb6   :  { %v482_v15 = vsel %vm474_vm8, %v450_v25, -inf  ;;  %v489_v29 = vsel %vm474_vm8, %v451_v26, -inf  ;;  %v496_v30 = vsel %vm474_vm8, %v452_v27, -inf  ;;  %v340_v26 = vpop.f32.mrf.mxu1 }
  0xb7   :  { %v477_v32 = vmax.f32 %v475_v28, %v476_v14  ;;  %v483_v33 = vrot.slane %v482_v15, 4  ;;  %v490_v34 = vrot.slane %v489_v29, 4  ;;  %v497_v35 = vrot.slane %v496_v30, 4  ;;  %v385_v36 = vpop.f32.mrf.mxu2 }
  0xb8   :  { %v394_v39 = vadd.f32 %v385_v36, %v346_v31  ;;  %v292_v40 = vpop.f32.mrf.mxu0  ;;  %v434_v45 = vpop.f32.mrf.mxu3 }
  0xb9   :  { %v478_v41 = vrot.slane %v477_v32, 2  ;;  %v484_v42 = vmax.f32 %v482_v15, %v483_v33  ;;  %v491_v43 = vmax.f32 %v489_v29, %v490_v34  ;;  %v498_v44 = vmax.f32 %v496_v30, %v497_v35 }
  0xba   :  { %v443_v50 = vadd.f32 %v434_v45, %v394_v39  ;;  %v299_v51 = vadd.f32 %v292_v40, %v250_v37  ;;  %v251_v29 = vadd.f32 %v1553_v6, %v202_v49  ;;  %v1295_v49 = vld [vmem:[%s1710_s3 + $0x28] sm:$0xff] }
  0xbb   :  { %v479_v52 = vmax.f32 %v477_v32, %v478_v41  ;;  %v485_v46 = vrot.slane %v484_v42, 2  ;;  %v492_v47 = vrot.slane %v491_v43, 2  ;;  %v499_v48 = vrot.slane %v498_v44, 2  ;;  %798 = vmatpush.bf16.msra.mxu2 %v1295_v49 }
  0xbc   :  { %v453_v53 = vrot.slane %v443_v50, 2  ;;  %v454_v54 = vrot.slane %v443_v50, 4  ;;  %v455_v55 = vrot.slane %v443_v50, 6  ;;  %v503_v56 = vsel %vm474_vm8, %v443_v50, -inf }
  0xbd   :  { %v480_v57 = vrot.slane %v479_v52, 1  ;;  %v486_v58 = vmax.f32 %v484_v42, %v485_v46  ;;  %v493_v59 = vmax.f32 %v491_v43, %v492_v47  ;;  %v500_v60 = vmax.f32 %v498_v44, %v499_v48 }
  0xbe   :  { %v504_v62 = vrot.slane %v503_v56, 4  ;;  %v510_v63 = vsel %vm474_vm8, %v453_v53, -inf  ;;  %v517_v0 = vsel %vm474_vm8, %v454_v54, -inf  ;;  %v524_v1 = vsel %vm474_vm8, %v455_v55, -inf  ;;  %v1291_v54 = vld [vmem:[%s1710_s3 + $0x8] sm:$0xff] }
  0xbf   :  { %v481_v2 = vmax.f32 %v479_v52, %v480_v57  ;;  %v487_v3 = vrot.slane %v486_v58, 1  ;;  %v494_v4 = vrot.slane %v493_v59, 1  ;;  %v501_v5 = vrot.slane %v500_v60, 1  ;;  %v388_v15 = vpop.f32.mrf.mxu2  ;;  %v1297_v52 = vld [vmem:[%s1710_s3 + $0x38] sm:$0xff]  ;;  %v1294_v57 = vld [vmem:[%s1710_s3 + $0x20] sm:$0xff]  ;;  %760 = vmatpush.bf16.msra.mxu1 %v1291_v54 }
  0xc0   :  { %v505_v7 = vmax.f32 %v503_v56, %v504_v62  ;;  %v511_v8 = vrot.slane %v510_v63, 4  ;;  %v518_v9 = vrot.slane %v517_v0, 4  ;;  %v525_v11 = vrot.slane %v524_v1, 4  ;;  %v294_v40 = vpop.f32.mrf.mxu0  ;;  %v437_v45 = vpop.f32.mrf.mxu3  ;;  %838 = vmatpush.bf16.msra.mxu3 %v1297_v52  ;;  %v1296_v62 = vld [vmem:[%s1710_s3 + $0x30] sm:$0xff]  ;;  %799 = vmatpush.bf16.msra.mxu2 %v1294_v57 }
  0xc1   :  { %v488_v12 = vmax.f32 %v486_v58, %v487_v3  ;;  %v495_v13 = vmax.f32 %v493_v59, %v494_v4  ;;  %v502_v16 = vmax.f32 %v500_v60, %v501_v5  ;;  %v591_v17 = vadd.f32 %v1563_v61, %v481_v2  ;;  %v1290_v5 = vld [vmem:[%s1710_s3] sm:$0xff] }
  0xc2   :  { %v506_v18 = vrot.slane %v505_v7, 2  ;;  %v512_v19 = vmax.f32 %v510_v63, %v511_v8  ;;  %v519_v20 = vmax.f32 %v517_v0, %v518_v9  ;;  %v526_v21 = vmax.f32 %v524_v1, %v525_v11  ;;  %v1292_v63 = vld [vmem:[%s1710_s3 + $0x10] sm:$0xff]  ;;  %v342_v1 = vpop.f32.mrf.mxu1 }
  0xc3   :  { %v592_v22 = vadd.f32 %v1563_v61, %v488_v12  ;;  %v593_v23 = vadd.f32 %v1563_v61, %v495_v13  ;;  %v594_v24 = vadd.f32 %v1563_v61, %v502_v16  ;;  %v607_v25 = vmax.f32 %v591_v17, 0.0  ;;  %761 = vmatpush.bf16.msra.mxu1 %v1290_v5 }
  0xc4   :  { %v507_v27 = vmax.f32 %v505_v7, %v506_v18  ;;  %v513_v28 = vrot.slane %v512_v19, 2  ;;  %v520_v10 = vrot.slane %v519_v20, 2  ;;  %v527_v14 = vrot.slane %v526_v21, 2  ;;  %839 = vmatpush.bf16.msra.mxu3 %v1296_v62 }
  0xc5   :  { %v608_v30 = vmax.f32 %v592_v22, 0.0  ;;  %v609_v31 = vmax.f32 %v593_v23, 0.0  ;;  %v610_v36 = vmax.f32 %v594_v24, 0.0  ;;  %v639_v37 = vrot.slane %v607_v25, 7 }
  0xc6   :  { %v508_v32 = vrot.slane %v507_v27, 1  ;;  %v514_v33 = vmax.f32 %v512_v19, %v513_v28  ;;  %v521_v34 = vmax.f32 %v519_v20, %v520_v10  ;;  %v528_v35 = vmax.f32 %v526_v21, %v527_v14 }
  0xc7   :  { %v640_v38 = vrot.slane %v608_v30, 6  ;;  %v347_v39 = vadd.f32 %v340_v26, %v299_v51  ;;  %v643_v41 = vrot.slane %v609_v31, 5  ;;  %v1293_v51 = vld [vmem:[%s1710_s3 + $0x18] sm:$0xff]  ;;  %v300_v53 = vadd.f32 %v294_v40, %v251_v29  ;;  %v390_v12 = vpop.f32.mrf.mxu2 }
  0xc8   :  { %v509_v42 = vmax.f32 %v507_v27, %v508_v32  ;;  %v515_v43 = vrot.slane %v514_v33, 1  ;;  %v522_v44 = vrot.slane %v521_v34, 1  ;;  %v529_v48 = vrot.slane %v528_v35, 1  ;;  %731 = vmatpush.bf16.msra.mxu0 %v1293_v51  ;;  %v439_v14 = vpop.f32.mrf.mxu3 }
  0xc9   :  { %v642_v50 = vsel %vm641_vm9, %v640_v38, %v639_v37  ;;  %v395_v6 = vadd.f32 %v388_v15, %v347_v39  ;;  %v646_v59 = vrot.slane %v610_v36, 4  ;;  %v348_v11 = vadd.f32 %v342_v1, %v300_v53 }
  0xca   :  { %v516_v46 = vmax.f32 %v514_v33, %v515_v43  ;;  %v523_v47 = vmax.f32 %v521_v34, %v522_v44  ;;  %v595_v55 = vadd.f32 %v1563_v61, %v509_v42  ;;  %v645_v58 = vsel %vm644_vm10, %v643_v41, %v642_v50 }
  0xcb   :  { %v444_v56 = vadd.f32 %v437_v45, %v395_v6  ;;  %v530_v7 = vmax.f32 %v528_v35, %v529_v48  ;;  %v648_v22 = vsel %vm647_vm11, %v646_v59, %v645_v58  ;;  %v396_v25 = vadd.f32 %v390_v12, %v348_v11 }
  0xcc   :  { %v596_v60 = vadd.f32 %v1563_v61, %v516_v46  ;;  %v611_v0 = vmax.f32 %v595_v55, 0.0  ;;  %v1602_v8 = vadd.f32 %v1563_v61, %v523_v47  ;;  %732 = vmatpush.bf16.msra.mxu0 %v1292_v63 }
  0xcd   :  { %v456_v2 = vrot.slane %v444_v56, 2  ;;  %v457_v3 = vrot.slane %v444_v56, 4  ;;  %v458_v4 = vrot.slane %v444_v56, 6  ;;  %v531_v9 = vsel %vm474_vm8, %v444_v56, -inf }
  0xce   :  { %v612_v13 = vmax.f32 %v596_v60, 0.0  ;;  %v532_v16 = vrot.slane %v531_v9, 4  ;;  %v649_v19 = vrot.slane %v611_v0, 3  ;;  %v1610_v26 = vadd.f32 %v1563_v61, %v530_v7 }
  0xcf   :  { %v538_v17 = vsel %vm474_vm8, %v456_v2, -inf  ;;  %v545_v18 = vsel %vm474_vm8, %v457_v3, -inf  ;;  %v552_v24 = vsel %vm474_vm8, %v458_v4, -inf  ;;  %v613_v15 = vmax.f32 %v1602_v8, 0.0 }
  0xd0   :  { %v539_v20 = vrot.slane %v538_v17, 4  ;;  %v546_v21 = vrot.slane %v545_v18, 4  ;;  %v533_v23 = vmax.f32 %v531_v9, %v532_v16  ;;  %v553_v10 = vrot.slane %v552_v24, 4 }
  0xd1   :  { %v652_v29 = vrot.slane %v612_v13, 2  ;;  %v445_v31 = vadd.f32 %v439_v14, %v396_v25  ;;  %v651_v32 = vsel %vm650_vm12, %v649_v19, %v648_v22  ;;  %v655_v16 = vrot.slane %v613_v15, 1 }
  0xd2   :  { %v540_v27 = vmax.f32 %v538_v17, %v539_v20  ;;  %v547_v28 = vmax.f32 %v545_v18, %v546_v21  ;;  %v534_v30 = vrot.slane %v533_v23, 2  ;;  %v554_v35 = vmax.f32 %v552_v24, %v553_v10 }
  0xd3   :  { %v459_v37 = vrot.slane %v445_v31, 2  ;;  %v460_v38 = vrot.slane %v445_v31, 4  ;;  %v461_v39 = vrot.slane %v445_v31, 6  ;;  %v559_v43 = vsel %vm474_vm8, %v445_v31, -inf }
  0xd4   :  { %v541_v33 = vrot.slane %v540_v27, 2  ;;  %v548_v34 = vrot.slane %v547_v28, 2  ;;  %v535_v36 = vmax.f32 %v533_v23, %v534_v30  ;;  %v555_v42 = vrot.slane %v554_v35, 2 }
  0xd5   :  { %v560_v45 = vrot.slane %v559_v43, 4  ;;  %v566_v50 = vsel %vm474_vm8, %v459_v37, -inf  ;;  %v573_v6 = vsel %vm474_vm8, %v460_v38, -inf  ;;  %v580_v54 = vsel %vm474_vm8, %v461_v39, -inf }
  0xd6   :  { %v542_v40 = vmax.f32 %v540_v27, %v541_v33  ;;  %v549_v41 = vmax.f32 %v547_v28, %v548_v34  ;;  %v536_v44 = vrot.slane %v535_v36, 1  ;;  %v556_v51 = vmax.f32 %v554_v35, %v555_v42 }
  0xd7   :  { %v567_v46 = vrot.slane %v566_v50, 4  ;;  %v561_v48 = vmax.f32 %v559_v43, %v560_v45  ;;  %v574_v53 = vrot.slane %v573_v6, 4  ;;  %v581_v63 = vrot.slane %v580_v54, 4 }
  0xd8   :  { %v543_v49 = vrot.slane %v542_v40, 1  ;;  %v550_v52 = vrot.slane %v549_v41, 1  ;;  %v537_v47 = vmax.f32 %v535_v36, %v536_v44  ;;  %v557_v57 = vrot.slane %v556_v51, 1 }
  0xd9   :  { %v568_v58 = vmax.f32 %v566_v50, %v567_v46  ;;  %v562_v60 = vrot.slane %v561_v48, 2  ;;  %v575_v62 = vmax.f32 %v573_v6, %v574_v53  ;;  %v582_v8 = vmax.f32 %v580_v54, %v581_v63 }
  0xda   :  { %v544_v55 = vmax.f32 %v542_v40, %v543_v49  ;;  %v551_v56 = vmax.f32 %v549_v41, %v550_v52  ;;  %v599_v59 = vadd.f32 %v1563_v61, %v537_v47  ;;  %v558_v0 = vmax.f32 %v556_v51, %v557_v57 }
  0xdb   :  { %v569_v3 = vrot.slane %v568_v58, 2  ;;  %v563_v5 = vmax.f32 %v561_v48, %v562_v60  ;;  %v576_v7 = vrot.slane %v575_v62, 2  ;;  %v583_v19 = vrot.slane %v582_v8, 2 }
  0xdc   :  { %v600_v1 = vadd.f32 %v1563_v61, %v544_v55  ;;  %v601_v2 = vadd.f32 %v1563_v61, %v551_v56  ;;  %v615_v4 = vmax.f32 %v599_v59, 0.0  ;;  %v602_v9 = vadd.f32 %v1563_v61, %v558_v0 }
  0xdd   :  { %v570_v13 = vmax.f32 %v568_v58, %v569_v3  ;;  %v564_v17 = vrot.slane %v563_v5, 1  ;;  %v577_v18 = vmax.f32 %v575_v62, %v576_v7  ;;  %v654_v23 = vsel %vm653_vm13, %v652_v29, %v651_v32 }
  0xde   :  { %v616_v11 = vmax.f32 %v600_v1, 0.0  ;;  %v617_v12 = vmax.f32 %v601_v2, 0.0  ;;  %v658_v20 = vrot.slane %v615_v4, 7  ;;  %v584_v28 = vmax.f32 %v582_v8, %v583_v19 }
  0xdf   :  { %v571_v22 = vrot.slane %v570_v13, 1  ;;  %v565_v25 = vmax.f32 %v563_v5, %v564_v17  ;;  %v578_v27 = vrot.slane %v577_v18, 1  ;;  %v614_v10 = vmax.f32 %v1610_v26, 0.0 }
  0xe0   :  { %v659_v21 = vrot.slane %v616_v11, 6  ;;  %v661_v24 = vrot.slane %v617_v12, 5  ;;  %v618_v14 = vmax.f32 %v602_v9, 0.0  ;;  %v585_v15 = vrot.slane %v584_v28, 1 }
  0xe1   :  { %v572_v31 = vmax.f32 %v570_v13, %v571_v22  ;;  %v579_v33 = vmax.f32 %v577_v18, %v578_v27  ;;  %v603_v34 = vadd.f32 %v1563_v61, %v565_v25  ;;  %v657_v35 = vsel %vm656_vm14, %v655_v16, %v654_v23  ;;  %v1299_v23 = vld [vmem:[%s1712_s5 + $0x8] sm:$0xff] }
  0xe2   :  { %v660_v30 = vsel %vm641_vm9, %v659_v21, %v658_v20  ;;  %v586_v32 = vmax.f32 %v584_v28, %v585_v15  ;;  %v663_v39 = vrot.slane %v618_v14, 4  ;;  %v675_v40 = vsel %vm397_vm7, 0.0, %v657_v35  ;;  %1011 = vmatpush.bf16.msrb.mxu0 %v1299_v23 }
  0xe3   :  { %v604_v36 = vadd.f32 %v1563_v61, %v572_v31  ;;  %v662_v29 = vsel %vm644_vm10, %v661_v24, %v660_v30  ;;  %v605_v37 = vadd.f32 %v1563_v61, %v579_v33  ;;  %v619_v38 = vmax.f32 %v603_v34, 0.0  ;;  %v1298_v24 = vld [vmem:[%s1712_s5] sm:$0xff] }
  0xe4   :  { %v606_v41 = vadd.f32 %v1563_v61, %v586_v32  ;;  %v677_v44 = vsel %vm397_vm7, %v614_v10, 0.0  ;;  %v664_v45 = vsel %vm647_vm11, %v663_v39, %v662_v29  ;;  %v700_v51 = vrot.slane %v675_v40, 1  ;;  %1033 = vmatpush.bf16.msrb.mxu1 %v1298_v24 }
  0xe5   :  { %v620_v26 = vmax.f32 %v604_v36, 0.0  ;;  %v621_v42 = vmax.f32 %v605_v37, 0.0  ;;  %v665_v43 = vrot.slane %v619_v38, 3  ;;  %v701_v47 = vrot.slane %v677_v44, 1 }
  0xe6   :  { %v622_v6 = vmax.f32 %v606_v41, 0.0  ;;  %v768_v48 = vrot.slane %v675_v40, 2  ;;  %v769_v53 = vrot.slane %v677_v44, 2  ;;  %v808_v55 = vrot.slane %v675_v40, 3 }
  0xe7   :  { %v667_v50 = vrot.slane %v620_v26, 2  ;;  %v666_v49 = vsel %vm650_vm12, %v665_v43, %v664_v45  ;;  %v669_v52 = vrot.slane %v621_v42, 1  ;;  %v809_v56 = vrot.slane %v677_v44, 3 }
  0xe8   :  { %v678_v54 = vsel %vm397_vm7, %v622_v6, 0.0  ;;  %v702_v2 = vsel %vm79_vm3, %v700_v51, %v701_v47  ;;  %v770_v3 = vsel %vm154_vm4, %v768_v48, %v769_v53 }
  0xe9   :  { %v668_v46 = vsel %vm653_vm13, %v667_v50, %v666_v49  ;;  %v704_v58 = vrot.slane %v678_v54, 1  ;;  %v772_v59 = vrot.slane %v678_v54, 2  ;;  %v812_v60 = vrot.slane %v678_v54, 3 }
  0xea   :  { %v670_v61 = vsel %vm656_vm14, %v669_v52, %v668_v46  ;;  %v810_v7 = vsel %vm203_vm5, %v808_v55, %v809_v56 }
  0xeb   :  { %v676_v57 = vsel %vm397_vm7, 0.0, %v670_v61  ;;  %vm1180_vm7 = vcmask 17408  }
  0xec   :  { %v695_v62 = vpack.c.bf16 %v676_v57, %v675_v40  ;;  %v703_v63 = vrot.slane %v676_v57, 1  ;;  %v771_v0 = vrot.slane %v676_v57, 2  ;;  %v811_v1 = vrot.slane %v676_v57, 3 }
  0xee   :  { %1255 = vmatmul.msk.bf16.vlgmr.msra.gmra.mxu1 %vm721_vm15, %v695_v62  ;;  %v705_v4 = vsel %vm79_vm3, %v703_v63, %v704_v58  ;;  %v773_v5 = vsel %vm154_vm4, %v771_v0, %v772_v59  ;;  %v813_v8 = vsel %vm203_vm5, %v811_v1, %v812_v60  ;;  %v1303_v63 = vld [vmem:[%s1711_s4] ss:$0 sm:$0xff]  ;;  %vm948_vm3 = vcmask 1041409  }
  0xef   :  { %v708_v9 = vpack.c.bf16 %v705_v4, %v702_v2  ;;  %v776_v11 = vpack.c.bf16 %v773_v5, %v770_v3  ;;  %v816_v12 = vpack.c.bf16 %v813_v8, %v810_v7  ;;  %vm1000_vm4 = vcmask 130048  }
  0xf0   :  { %vm1046_vm5 = vcmask 58368  }
  0xf1   :  { %1246 = vmatmul.msk.bf16.vlgmr.msra.gmra.mxu0 %vm721_vm15, %v708_v9  ;;  %1264 = vmatmul.msk.bf16.vlgmr.msra.gmra.mxu2 %vm721_vm15, %v776_v11 }
  0xf2   :  { %1273 = vmatmul.msk.bf16.vlgmr.msra.gmra.mxu3 %vm721_vm15, %v816_v12 }
 0x16b   :  { %v763_v16 = vpop.f32.mrf.mxu1 }
 0x16e   :  { %v734_v13 = vpop.f32.mrf.mxu0 }
 0x16f   :  { %v764_v17 = vadd.f32 %v763_v16, %v734_v13 }
 0x173   :  { %v765_v14 = vpop.f32.mrf.mxu1 }
 0x174   :  { %v801_v18 = vpop.f32.mrf.mxu2 }
 0x175   :  { %v806_v19 = vadd.f32 %v801_v18, %v764_v17  ;;  %v841_v20 = vpop.f32.mrf.mxu3 }
 0x176   :  { %v736_v22 = vpop.f32.mrf.mxu0 }
 0x177   :  { %v846_v21 = vadd.f32 %v841_v20, %v806_v19  ;;  %v766_v34 = vadd.f32 %v765_v14, %v736_v22 }
 0x179   :  { %v850_v25 = vrot.slane %v846_v21, 2  ;;  %v851_v27 = vrot.slane %v846_v21, 4  ;;  %v852_v28 = vrot.slane %v846_v21, 6  ;;  %v863_v10 = vsel %vm862_vm1, %v846_v21, -inf }
 0x17a   :  { %v864_v30 = vrot.slane %v863_v10, 4 }
 0x17b   :  { %v870_v31 = vsel %vm862_vm1, %v850_v25, -inf  ;;  %v877_v33 = vsel %vm862_vm1, %v851_v27, -inf  ;;  %v884_v15 = vsel %vm862_vm1, %v852_v28, -inf }
 0x17c   :  { %v865_v35 = vmax.f32 %v863_v10, %v864_v30  ;;  %v871_v36 = vrot.slane %v870_v31, 4  ;;  %v878_v29 = vrot.slane %v877_v33, 4  ;;  %v885_v32 = vrot.slane %v884_v15, 4  ;;  %v803_v37 = vpop.f32.mrf.mxu2 }
 0x17d   :  { %v807_v38 = vadd.f32 %v803_v37, %v766_v34  ;;  %v843_v42 = vpop.f32.mrf.mxu3 }
 0x17e   :  { %v866_v39 = vrot.slane %v865_v35, 2  ;;  %v872_v26 = vmax.f32 %v870_v31, %v871_v36  ;;  %v879_v40 = vmax.f32 %v877_v33, %v878_v29  ;;  %v886_v41 = vmax.f32 %v884_v15, %v885_v32 }
 0x17f   :  { %v847_v43 = vadd.f32 %v843_v42, %v807_v38 }
 0x180   :  { %v867_v44 = vmax.f32 %v865_v35, %v866_v39  ;;  %v873_v45 = vrot.slane %v872_v26, 2  ;;  %v880_v50 = vrot.slane %v879_v40, 2  ;;  %v887_v6 = vrot.slane %v886_v41, 2 }
 0x181   :  { %v853_v49 = vrot.slane %v847_v43, 2  ;;  %v854_v52 = vrot.slane %v847_v43, 4  ;;  %v855_v51 = vrot.slane %v847_v43, 6  ;;  %v891_v46 = vsel %vm862_vm1, %v847_v43, -inf }
 0x182   :  { %v868_v47 = vrot.slane %v867_v44, 1  ;;  %v874_v48 = vmax.f32 %v872_v26, %v873_v45  ;;  %v881_v53 = vmax.f32 %v879_v40, %v880_v50  ;;  %v888_v61 = vmax.f32 %v886_v41, %v887_v6 }
 0x183   :  { %v892_v54 = vrot.slane %v891_v46, 4  ;;  %v898_v55 = vsel %vm862_vm1, %v853_v49, -inf  ;;  %v905_v56 = vsel %vm862_vm1, %v854_v52, -inf  ;;  %v912_v57 = vsel %vm862_vm1, %v855_v51, -inf }
 0x184   :  { %v869_v58 = vmax.f32 %v867_v44, %v868_v47  ;;  %v875_v59 = vrot.slane %v874_v48, 1  ;;  %v882_v60 = vrot.slane %v881_v53, 1  ;;  %v889_v62 = vrot.slane %v888_v61, 1 }
 0x185   :  { %v893_v0 = vmax.f32 %v891_v46, %v892_v54  ;;  %v899_v1 = vrot.slane %v898_v55, 4  ;;  %v906_v2 = vrot.slane %v905_v56, 4  ;;  %v913_v3 = vrot.slane %v912_v57, 4 }
 0x186   :  { %v876_v4 = vmax.f32 %v874_v48, %v875_v59  ;;  %v883_v5 = vmax.f32 %v881_v53, %v882_v60  ;;  %v890_v7 = vmax.f32 %v888_v61, %v889_v62  ;;  %v923_v13 = vadd.f32 %v1303_v63, %v869_v58 }
 0x187   :  { %v894_v8 = vrot.slane %v893_v0, 2  ;;  %v900_v9 = vmax.f32 %v898_v55, %v899_v1  ;;  %v907_v11 = vmax.f32 %v905_v56, %v906_v2  ;;  %v914_v12 = vmax.f32 %v912_v57, %v913_v3 }
 0x188   :  { %v924_v16 = vadd.f32 %v1303_v63, %v876_v4  ;;  %v925_v17 = vadd.f32 %v1303_v63, %v883_v5  ;;  %v926_v18 = vadd.f32 %v1303_v63, %v890_v7  ;;  %v931_v30 = vmax.f32 %v923_v13, 0.0 }
 0x189   :  { %v895_v19 = vmax.f32 %v893_v0, %v894_v8  ;;  %v901_v20 = vrot.slane %v900_v9, 2  ;;  %v908_v21 = vrot.slane %v907_v11, 2  ;;  %v915_v22 = vrot.slane %v914_v12, 2 }
 0x18a   :  { %v932_v23 = vmax.f32 %v924_v16, 0.0  ;;  %v933_v24 = vmax.f32 %v925_v17, 0.0  ;;  %v934_v25 = vmax.f32 %v926_v18, 0.0 }
 0x18b   :  { %v896_v27 = vrot.slane %v895_v19, 1  ;;  %v902_v28 = vmax.f32 %v900_v9, %v901_v20  ;;  %v909_v10 = vmax.f32 %v907_v11, %v908_v21  ;;  %v916_v14 = vmax.f32 %v914_v12, %v915_v22 }
 0x18c   :  { %v947_v31 = vrot.slane %v932_v23, 7  ;;  %v950_v33 = vrot.slane %v933_v24, 6  ;;  %v952_v32 = vrot.slane %v934_v25, 5  ;;  %v1339_v25 = vmov 2.0  }
 0x18d   :  { %v897_v15 = vmax.f32 %v895_v19, %v896_v27  ;;  %v903_v34 = vrot.slane %v902_v28, 1  ;;  %v910_v35 = vrot.slane %v909_v10, 1  ;;  %v917_v36 = vrot.slane %v916_v14, 1 }
 0x18e   :  { %v949_v29 = vsel %vm948_vm3, %v947_v31, %v931_v30  ;;  %1307 = vrcp.f32 %v1339_v25 }
 0x18f   :  { %v951_v37 = vsel %vm641_vm9, %v950_v33, %v949_v29  ;;  %v904_v38 = vmax.f32 %v902_v28, %v903_v34  ;;  %v911_v39 = vmax.f32 %v909_v10, %v910_v35  ;;  %v918_v26 = vmax.f32 %v916_v14, %v917_v36 }
 0x190   :  { %v927_v40 = vadd.f32 %v1303_v63, %v897_v15  ;;  %v953_v41 = vsel %vm644_vm10, %v952_v32, %v951_v37  ;;  %v1304_v32 = vld [vmem:[%s1713_s6] ss:$0 sm:$0xff] }
 0x191   :  { %v928_v42 = vadd.f32 %v1303_v63, %v904_v38  ;;  %v929_v43 = vadd.f32 %v1303_v63, %v911_v39  ;;  %v930_v44 = vadd.f32 %v1303_v63, %v918_v26  ;;  %v962_v45 = vsel %vm252_vm6, %v953_v41, 0.0  ;;  %v1122_v63 = vld [vmem:[%s1714_s7] sm:$0xf] }
 0x192   :  { %970 = vst [vmem:[#allocation1] ss:$2 sm:$0xff] %v962_v45  ;;  %v935_v52 = vmax.f32 %v927_v40, 0.0  ;;  %v1274_v55 = vrot.slane %v962_v45, 9  ;;  %v1139_v0 = vsel %vm252_vm6, %v1122_v63, 0 }
 0x193   :  { %v936_v50 = vmax.f32 %v928_v42, 0.0  ;;  %v937_v6 = vmax.f32 %v929_v43, 0.0  ;;  %v938_v49 = vmax.f32 %v930_v44, 0.0  ;;  %1148 = vmatpush.bf16.msrb.mxu2 %v1139_v0  ;;  %v1156_v40 = vld [vmem:[%s1716_s9] sm:$0x3] }
 0x194   :  { %v1308_v37 = vpop.eup %1307 }
 0x195   :  { %v954_v51 = vrot.slane %v936_v50, 7  ;;  %v956_v46 = vrot.slane %v937_v6, 6  ;;  %v958_v48 = vrot.slane %v938_v49, 5  ;;  %v1112_v45 = vmul.f32 2.0, %v1308_v37 }
 0x196   :  { %v1165_v50 = vsel %vm103_vm0, %v1156_v40, 0  ;;  %vm1116_vm0 = vweird.f32 %v1308_v37 }
 0x197   :  { %v955_v47 = vsel %vm948_vm3, %v954_v51, %v935_v52  ;;  %1174 = vmatpush.bf16.msrb.mxu3 %v1165_v50 }
 0x198   :  { %v957_v53 = vsel %vm641_vm9, %v956_v46, %v955_v47 }
 0x199   :  { %v959_v61 = vsel %vm644_vm10, %v958_v48, %v957_v53  ;;  %v1113_v48 = vsub.f32 1.0, %v1112_v45 }
 0x19a   :  { %v963_v54 = vsel %vm252_vm6, %v959_v61, 0.0  ;;  %vm1134_vm6 = vcmask 64512  }
 0x19b   :  { %972 = vst [vmem:[#allocation1 + $0x1] ss:$2 sm:$0xff] %v963_v54  ;;  %v1276_v57 = vrot.slane %v963_v54, 9 }
 0x1a2   :  { %v973_v56 = vld.sshfl [vmem:[#allocation1] sm:$0xff pattern:$0x75316420] }
 0x1a3   :  { %v975_v58 = vpack.c.bf16 %v973_v56, %v973_v56  ;;  %988 = vst [vmem:[#allocation1] ss:$2 sm:$0xff] %v1274_v55 }
 0x1a4   :  { %990 = vst [vmem:[#allocation1 + $0x1] ss:$2 sm:$0xff] %v1276_v57 }
 0x1a5   :  { %1287 = vmatmul.msk.bf16.vlgmr.msrb.gmra.mxu1 %vm1000_vm4, %v975_v58  ;;  %v1114_v58 = vmul.f32 %v1308_v37, %v1113_v48 }
 0x1a7   :  { %v1115_v0 = vadd.f32 %v1308_v37, %v1114_v58 }
 0x1ab   :  { %v991_v59 = vld.sshfl [vmem:[#allocation1] sm:$0xff pattern:$0x75316420] }
 0x1ac   :  { %v993_v60 = vpack.c.bf16 %v991_v59, %v991_v59 }
 0x1ae   :  { %1282 = vmatmul.msk.bf16.vlgmr.msrb.gmra.mxu0 %vm1000_vm4, %v993_v60 }
 0x222   :  { %v1035_v62 = vpop.f32.mrf.mxu1 }
 0x22a   :  { %v1037_v1 = vpop.f32.mrf.mxu1 }
 0x22b   :  { %v1013_v2 = vpop.f32.mrf.mxu0 }
 0x22c   :  { %v1036_v3 = vadd.f32 %v1035_v62, %v1013_v2 }
 0x22e   :  { %v1040_v4 = vrot.slane %v1036_v3, 2  ;;  %v1041_v5 = vrot.slane %v1036_v3, 4  ;;  %v1042_v7 = vrot.slane %v1036_v3, 6  ;;  %v1047_v8 = vsel %vm1046_vm5, %v1036_v3, -inf }
 0x22f   :  { %v1048_v9 = vrot.slane %v1047_v8, 4 }
 0x230   :  { %v1054_v11 = vsel %vm1046_vm5, %v1040_v4, -inf  ;;  %v1061_v12 = vsel %vm1046_vm5, %v1041_v5, -inf  ;;  %v1068_v13 = vsel %vm1046_vm5, %v1042_v7, -inf  ;;  %v1117_v5 = vsel %vm1116_vm0, %v1308_v37, %v1115_v0 }
 0x231   :  { %v1049_v16 = vmax.f32 %v1047_v8, %v1048_v9  ;;  %v1055_v17 = vrot.slane %v1054_v11, 4  ;;  %v1062_v18 = vrot.slane %v1061_v12, 4  ;;  %v1069_v19 = vrot.slane %v1068_v13, 4 }
 0x233   :  { %v1050_v20 = vrot.slane %v1049_v16, 2  ;;  %v1056_v21 = vmax.f32 %v1054_v11, %v1055_v17  ;;  %v1063_v22 = vmax.f32 %v1061_v12, %v1062_v18  ;;  %v1070_v23 = vmax.f32 %v1068_v13, %v1069_v19  ;;  %v1015_v24 = vpop.f32.mrf.mxu0 }
 0x235   :  { %v1051_v27 = vmax.f32 %v1049_v16, %v1050_v20  ;;  %v1057_v28 = vrot.slane %v1056_v21, 2  ;;  %v1064_v10 = vrot.slane %v1063_v22, 2  ;;  %v1071_v14 = vrot.slane %v1070_v23, 2 }
 0x237   :  { %v1052_v30 = vrot.slane %v1051_v27, 1  ;;  %v1058_v31 = vmax.f32 %v1056_v21, %v1057_v28  ;;  %v1065_v33 = vmax.f32 %v1063_v22, %v1064_v10  ;;  %v1072_v15 = vmax.f32 %v1070_v23, %v1071_v14  ;;  %v1305_v21 = vld [vmem:[%s1715_s8] ss:$0 sm:$0xff]  ;;  %s1340_s8 = smov [#allocation2]  }
 0x238   :  { %v1306_v28 = vld [vmem:[%s1717_s10] ss:$0 sm:$0xff]  ;;  %s1211_s10 = sshll.u32 %s1340_s8, 4  ;;  %s1212_s10 = int_to_ptr.vmem [resolvable:$true] %s1211_s10 }
 0x239   :  { %v1053_v34 = vmax.f32 %v1051_v27, %v1052_v30  ;;  %v1059_v35 = vrot.slane %v1058_v31, 1  ;;  %v1066_v36 = vrot.slane %v1065_v33, 1  ;;  %v1073_v29 = vrot.slane %v1072_v15, 1 }
 0x23b   :  { %v1060_v38 = vmax.f32 %v1058_v31, %v1059_v35  ;;  %v1067_v39 = vmax.f32 %v1065_v33, %v1066_v36  ;;  %v1074_v26 = vmax.f32 %v1072_v15, %v1073_v29  ;;  %v1079_v41 = vadd.f32 %v1304_v32, %v1053_v34 }
 0x23d   :  { %v1080_v42 = vadd.f32 %v1304_v32, %v1060_v38  ;;  %v1081_v43 = vadd.f32 %v1304_v32, %v1067_v39  ;;  %v1082_v44 = vadd.f32 %v1304_v32, %v1074_v26  ;;  %v1083_v52 = vmax.f32 %v1079_v41, 0.0 }
 0x23f   :  { %v1084_v6 = vmax.f32 %v1080_v42, 0.0  ;;  %v1086_v49 = vmax.f32 %v1082_v44, 0.0  ;;  %v1085_v51 = vmax.f32 %v1081_v43, 0.0 }
 0x241   :  { %v1091_v46 = vrot.slane %v1084_v6, 7  ;;  %v1093_v47 = vrot.slane %v1086_v49, 7 }
 0x243   :  { %v1092_v53 = vsel %vm948_vm3, %v1091_v46, %v1083_v52  ;;  %v1094_v61 = vsel %vm948_vm3, %v1093_v47, %v1085_v51 }
 0x244   :  { %v1097_v54 = vsel %vm1046_vm5, %v1092_v53, 0.0  ;;  %v1104_v55 = vsel %vm1046_vm5, %v1094_v61, 0.0 }
 0x245   :  { %v1098_v56 = vrot.slane %v1097_v54, 4  ;;  %v1105_v57 = vrot.slane %v1104_v55, 4 }
 0x247   :  { %v1099_v59 = vadd.f32 %v1098_v56, %v1097_v54  ;;  %v1106_v60 = vadd.f32 %v1105_v57, %v1104_v55 }
 0x249   :  { %v1100_v62 = vrot.slane %v1099_v59, 2  ;;  %v1107_v63 = vrot.slane %v1106_v60, 2 }
 0x24b   :  { %v1101_v1 = vadd.f32 %v1100_v62, %v1099_v59  ;;  %v1108_v2 = vadd.f32 %v1107_v63, %v1106_v60 }
 0x24d   :  { %v1102_v3 = vrot.slane %v1101_v1, 1  ;;  %v1109_v4 = vrot.slane %v1108_v2, 1 }
 0x24f   :  { %v1103_v7 = vadd.f32 %v1102_v3, %v1101_v1  ;;  %v1110_v8 = vadd.f32 %v1109_v4, %v1108_v2 }
 0x251   :  { %v1118_v9 = vmul.f32 %v1117_v5, %v1103_v7  ;;  %v1119_v11 = vmul.f32 %v1117_v5, %v1110_v8 }
 0x253   :  { %v1120_v12 = vpack.c.bf16 %v1118_v9, %v1118_v9  ;;  %v1121_v13 = vpack.c.bf16 %v1119_v11, %v1119_v11 }
 0x255   :  { %v1130_v16 = vunpack.c.l.b16 %v1121_v13  ;;  %v1129_v17 = vunpack.c.l.b16 %v1120_v12 }
 0x257   :  { %v1131_v18 = vrot.slane %v1130_v16, 7 }
 0x259   :  { %v1132_v19 = vsel %vm948_vm3, %v1131_v18, %v1129_v17 }
 0x25a   :  { %v1133_v20 = vpack.c.b16 %v1132_v19, %v1132_v19 }
 0x25c   :  { %1288 = vmatmul.msk.bf16.vlgmr.msrb.gmra.mxu2 %vm1134_vm6, %v1133_v20 }
 0x2df   :  { %v1150_v22 = vpop.f32.mrf.mxu2 }
 0x2e0   :  { %v1151_v23 = vadd.f32 %v1305_v21, %v1150_v22 }
 0x2e2   :  { %v1154_v24 = vmax.f32 %v1151_v23, 0.0 }
 0x2e4   :  { %v1155_v25 = vpack.c.bf16 %v1154_v24, %v1154_v24 }
 0x2e6   :  { %1289 = vmatmul.msk.bf16.vlgmr.msrb.gmra.mxu3 %vm96_vm2, %v1155_v25 }
 0x2e7   :  { %v1152_v27 = vpop.f32.mrf.mxu2 }
 0x369   :  { %v1176_v10 = vpop.f32.mrf.mxu3 }
 0x36a   :  { %v1177_v14 = vadd.f32 %v1306_v28, %v1176_v10 }
 0x36c   :  { %v1181_v30 = vsel %vm1180_vm7, %v1177_v14, -inf }
 0x36d   :  { %1182 = vmax.xlane.f32.xlu0 %v1181_v30 }
 0x371   :  { %v1178_v31 = vpop.f32.mrf.mxu3 }
 0x3e0   :  { %v1183_v33 = vpop.xlane.xlu0 %1182 }
 0x3e1   :  { %v1184_v15 = vsub.f32 %v1177_v14, %v1183_v33 }
 0x3e3   :  { %v1185_v34 = vmul.f32 1.442695, %v1184_v15 }
 0x3e5   :  { %1309 = vpow2.f32 %v1185_v34 }
 0x3eb   :  { %v1310_v35 = vpop.eup %1309 }
 0x3ec   :  { %v1187_v36 = vsel %vm1180_vm7, %v1310_v35, 0.0 }
 0x3ed   :  { %1188 = vadd.xlane.f32.xlu0 %v1187_v36 }
 0x460   :  { %v1189_v29 = vpop.xlane.xlu0 %1188 }
 0x461   :  { %1311 = vrcp.f32 %v1189_v29  ;;  %v1201_v39 = vand.u32 2147483648, %v1189_v29  ;;  %v1199_v40 = vand.u32 2147483647, %v1189_v29  ;;  %vm1195_vm8 = vweird.f32 %v1189_v29 }
 0x463   :  { %v1202_v42 = vor.u32 1.1754944e-38, %v1201_v39  ;;  %vm1200_vm10 = vcmp.eq.f32.partialorder %v1199_v40, 8.507059e+37 }
 0x467   :  { %v1312_v32 = vpop.eup %1311 }
 0x468   :  { %v1191_v37 = vmul.f32 %v1312_v32, %v1189_v29  ;;  %vm1196_vm2 = vweird.f32 %v1312_v32 }
 0x469   :  { %vm1197_vm9 = vmor %vm1195_vm8, %vm1196_vm2 }
 0x46a   :  { %v1192_v38 = vsub.f32 1.0, %v1191_v37 }
 0x46c   :  { %v1193_v26 = vmul.f32 %v1312_v32, %v1192_v38 }
 0x46e   :  { %v1194_v41 = vadd.f32 %v1312_v32, %v1193_v26 }
 0x470   :  { %v1198_v43 = vsel %vm1197_vm9, %v1312_v32, %v1194_v41 }
 0x471   :  { %v1203_v44 = vsel %vm1200_vm10, %v1202_v42, %v1198_v43 }
 0x472   :  { %v1204_v45 = vmul.f32 %v1310_v35, %v1203_v44 }
 0x474   :  { %1205 = vst.msk [vmem:[#allocation2] sm:$0x3] %vm1180_vm7, %v1204_v45 }
 0x475   :  { %1216 = dma.vmem_to_hbm [thread:$0]  %s1212_s10, 32, %s1214_s27, [#allocation3]  }
 0x476   :  { %1337 = dma.done.wait [#allocation3], 32  }
 0x477   :  { %1338 = vsyncadd [#allocation3], 4294967264 }
 0x478   :  { %1221 = vsyncpa [#allocation3], 1 }

</bundles_post_ra>
